<compile_context>
chip_gen: v6e
topology: v6e:2x2x1
jax: 0.10.0
libtpu: 0.0.40
codegen_flags: <defaults>
</compile_context>

<pallas_src>
import numpy as np
import jax
import jax.numpy as jnp
from jax import lax
from jax.experimental import pallas as pl
from jax.experimental.pallas import tpu as pltpu

EPS = 1e-6  # nn.LayerNorm(d_model, eps=1e-6)


def _layernorm(x, gamma, beta):
    mu = jnp.mean(x, axis=-1, keepdims=True)
    var = jnp.mean((x - mu) ** 2, axis=-1, keepdims=True)
    return (x - mu) * lax.rsqrt(var + EPS) * gamma + beta


def _encoder_layer(x, key_mask, wq, wk, wv, wo, ln1g, ln1b,
                   w1, b1, w2, b2, ln2g, ln2b, inv_temp):
    """One encoder layer (MHA + FFN). Head-batched einsums, bf16 matmul
    operands / f32 accumulation.  Shared verbatim by the Pallas kernel and the
    pure-JAX reference so the two can be compared at tight tolerance."""
    n_head = wq.shape[0]

    # ---------------- multi-head self-attention ----------------
    residual = x
    xb = jnp.broadcast_to(x.astype(jnp.bfloat16)[None], (n_head,) + x.shape)  # (H,S,D)
    q = jnp.einsum('hsd,hdk->hsk', xb, wq, preferred_element_type=jnp.float32)
    k = jnp.einsum('hsd,hdk->hsk', xb, wk, preferred_element_type=jnp.float32)
    v = jnp.einsum('hsd,hdv->hsv', xb, wv, preferred_element_type=jnp.float32)
    s = jnp.einsum('hqc,hkc->hqk', q.astype(jnp.bfloat16), k.astype(jnp.bfloat16),
                   preferred_element_type=jnp.float32) * inv_temp            # (H,S,S)
    s = jnp.where(key_mask == 0.0, -1e9, s)       # masked_fill(mask==0, -1e9)
    m = jnp.max(s, axis=-1, keepdims=True)
    e = jnp.exp(s - m)
    p = e / jnp.sum(e, axis=-1, keepdims=True)    # exact softmax over keys
    # TODO(synk): attention dropout skipped (eval-mode identity).
    ctx = jnp.einsum('hqk,hkv->hqv', p.astype(jnp.bfloat16), v.astype(jnp.bfloat16),
                     preferred_element_type=jnp.float32)                     # (H,S,dv)
    y = jnp.einsum('hqv,hvd->hqd', ctx.astype(jnp.bfloat16), wo,
                   preferred_element_type=jnp.float32)                       # (H,S,D)
    y = jnp.sum(y, axis=0)                        # contract the head axis
    # TODO(synk): output dropout skipped (eval-mode identity).
    x = _layernorm(y + residual, ln1g, ln1b)

    # ---------------- position-wise FFN ----------------
    residual = x
    h = jnp.dot(x.astype(jnp.bfloat16), w1, preferred_element_type=jnp.float32) + b1
    h = jnp.maximum(h, 0.0)                       # ReLU
    y = jnp.dot(h.astype(jnp.bfloat16), w2, preferred_element_type=jnp.float32) + b2
    # TODO(synk): FFN dropout skipped (eval-mode identity).
    return _layernorm(y + residual, ln2g, ln2b)


# --------------------------------------------------------------------------
# Kernel: grid=(B, L).  One grid step = one (batch element, layer).
# Activations live in a VMEM scratch across the layer axis.
# --------------------------------------------------------------------------
def make_encoder_kernel(seq_len, d_k):
    inv_temp = 1.0 / (float(d_k) ** 0.5)

    def kernel(seq_ref,                                   # SMEM (scalar prefetch)
               mask_ref, emb_ref, pos_ref, ln0g_ref, ln0b_ref,
               wq_ref, wk_ref, wv_ref, wo_ref, ln1g_ref, ln1b_ref,
               w1_ref, b1_ref, w2_ref, b2_ref, ln2g_ref, ln2b_ref,
               o_ref, x_state):
        b = pl.program_id(0)
        layer = pl.program_id(1)

        @pl.when(layer == 0)
        def _():
            # fused embedding gather: token ids come from SMEM, rows are
            # dynamic-sliced out of the VMEM-resident embedding table.
            for s in range(seq_len):
                tok = seq_ref[b, s]
                x_state[pl.ds(s, 1), :] = emb_ref[pl.ds(tok, 1), :]
            # + sinusoidal positional encoding, then input LayerNorm
            # (dropout after the positional encoding is eval-mode identity).
            x_state[...] = _layernorm(x_state[...] + pos_ref[...],
                                      ln0g_ref[...], ln0b_ref[...])

        x_new = _encoder_layer(x_state[...], mask_ref[...],
                               wq_ref[0], wk_ref[0], wv_ref[0], wo_ref[0],
                               ln1g_ref[0], ln1b_ref[0],
                               w1_ref[0], b1_ref[0], w2_ref[0], b2_ref[0],
                               ln2g_ref[0], ln2b_ref[0], inv_temp)
        x_state[...] = x_new

        @pl.when(layer == pl.num_programs(1) - 1)
        def _():
            o_ref[0] = x_new

    return kernel


def pack_params(params):
    """Stack per-layer weights along a leading layer axis.  Matmul operands
    are stored in bf16 (MXU-native); LayerNorm params and biases stay f32."""
    layers = params["layers"]
    bf = jnp.bfloat16
    return dict(
        emb=params["emb"],
        ln0g=params["ln0_g"], ln0b=params["ln0_b"],
        wq=jnp.stack([lp["wq"] for lp in layers]).astype(bf),   # (L,H,D,dk)
        wk=jnp.stack([lp["wk"] for lp in layers]).astype(bf),
        wv=jnp.stack([lp["wv"] for lp in layers]).astype(bf),   # (L,H,D,dv)
        wo=jnp.stack([lp["wo"] for lp in layers]).astype(bf),   # (L,H,dv,D)
        ln1g=jnp.stack([lp["ln1_g"] for lp in layers]),
        ln1b=jnp.stack([lp["ln1_b"] for lp in layers]),
        w1=jnp.stack([lp["w1"] for lp in layers]).astype(bf),   # (L,D,d_inner)
        b1=jnp.stack([lp["b1"] for lp in layers]),
        w2=jnp.stack([lp["w2"] for lp in layers]).astype(bf),   # (L,d_inner,D)
        b2=jnp.stack([lp["b2"] for lp in layers]),
        ln2g=jnp.stack([lp["ln2_g"] for lp in layers]),
        ln2b=jnp.stack([lp["ln2_b"] for lp in layers]),
    )


def encoder_forward_pallas(src_seq, src_mask, packed, pos_table):
    B, S = src_seq.shape
    n_vocab, D = packed["emb"].shape
    L, H, _, d_k = packed["wq"].shape
    d_v = packed["wv"].shape[-1]
    d_inner = packed["w1"].shape[-1]
    pos = pos_table[:S]

    def const_spec(shape):                      # block index constant across grid
        nd = len(shape)
        return pl.BlockSpec(shape, lambda b, l, seq, _nd=nd: (0,) * _nd)

    def layer_spec(shape):                      # one layer's slab per grid step
        nd = len(shape)
        return pl.BlockSpec((1,) + shape,
                            lambda b, l, seq, _nd=nd: (l,) + (0,) * _nd)

    grid_spec = pltpu.PrefetchScalarGridSpec(
        num_scalar_prefetch=1,                  # src_seq token ids -> SMEM
        grid=(B, L),                            # layer axis pipelines weight DMA
        in_specs=[
            pl.BlockSpec((1, 1, S), lambda b, l, seq: (b, 0, 0)),   # key-padding mask
            const_spec((n_vocab, D)),                                # embedding table
            const_spec((S, D)),                                      # positional table
            const_spec((1, D)), const_spec((1, D)),                  # ln0 gamma/beta
            layer_spec((H, D, d_k)),                                 # Wq (bf16)
            layer_spec((H, D, d_k)),                                 # Wk (bf16)
            layer_spec((H, D, d_v)),                                 # Wv (bf16)
            layer_spec((H, d_v, D)),                                 # Wo (bf16)
            layer_spec((1, D)), layer_spec((1, D)),                  # ln1 gamma/beta
            layer_spec((D, d_inner)), layer_spec((1, d_inner)),      # FFN w1/b1
            layer_spec((d_inner, D)), layer_spec((1, D)),            # FFN w2/b2
            layer_spec((1, D)), layer_spec((1, D)),                  # ln2 gamma/beta
        ],
        out_specs=pl.BlockSpec((1, S, D), lambda b, l, seq: (b, 0, 0)),
        scratch_shapes=[pltpu.VMEM((S, D), jnp.float32)],            # resident activations
    )

    return pl.pallas_call(
        make_encoder_kernel(S, d_k),
        out_shape=jax.ShapeDtypeStruct((B, S, D), jnp.float32),
        grid_spec=grid_spec,
        compiler_params=pltpu.CompilerParams(
            dimension_semantics=("parallel", "arbitrary"),
            vmem_limit_bytes=48 * 1024 * 1024),
    )(src_seq, src_mask, packed["emb"], pos,
      packed["ln0g"], packed["ln0b"],
      packed["wq"], packed["wk"], packed["wv"], packed["wo"],
      packed["ln1g"], packed["ln1b"],
      packed["w1"], packed["b1"], packed["w2"], packed["b2"],
      packed["ln2g"], packed["ln2b"])


# --------------------------------------------------------------------------
# Parameter init + pure-JAX reference (same math / same precision policy).
# --------------------------------------------------------------------------
def sinusoid_table(n_position, d_hid):
    pos = np.arange(n_position)[:, None].astype(np.float64)
    i = np.arange(d_hid)[None, :].astype(np.float64)
    angle = pos / np.power(10000.0, 2.0 * (i // 2) / d_hid)
    table = np.zeros((n_position, d_hid), dtype=np.float32)
    table[:, 0::2] = np.sin(angle[:, 0::2])
    table[:, 1::2] = np.cos(angle[:, 1::2])
    return jnp.asarray(table)


def init_params(key, n_vocab, pad_idx, d_model, n_layers, n_head, d_k, d_v, d_inner):
    keys = jax.random.split(key, 1 + 7 * n_layers)
    emb = 0.02 * jax.random.normal(keys[0], (n_vocab, d_model), jnp.float32)
    emb = emb.at[pad_idx].set(0.0)  # nn.Embedding(padding_idx=pad_idx)
    params = {
        "emb": emb,
        "ln0_g": jnp.ones((1, d_model), jnp.float32),
        "ln0_b": jnp.zeros((1, d_model), jnp.float32),
        "layers": [],
    }
    kidx = 1
    for _ in range(n_layers):
        lp = {
            "wq": 0.1 * jax.random.normal(keys[kidx + 0], (n_head, d_model, d_k), jnp.float32),
            "wk": 0.1 * jax.random.normal(keys[kidx + 1], (n_head, d_model, d_k), jnp.float32),
            "wv": 0.1 * jax.random.normal(keys[kidx + 2], (n_head, d_model, d_v), jnp.float32),
            "wo": 0.1 * jax.random.normal(keys[kidx + 3], (n_head, d_v, d_model), jnp.float32),
            "ln1_g": jnp.ones((1, d_model), jnp.float32),
            "ln1_b": jnp.zeros((1, d_model), jnp.float32),
            "w1": 0.1 * jax.random.normal(keys[kidx + 4], (d_model, d_inner), jnp.float32),
            "b1": 0.01 * jax.random.normal(keys[kidx + 5], (1, d_inner), jnp.float32),
            "w2": 0.1 * jax.random.normal(keys[kidx + 6], (d_inner, d_model), jnp.float32),
            "b2": jnp.zeros((1, d_model), jnp.float32),
            "ln2_g": jnp.ones((1, d_model), jnp.float32),
            "ln2_b": jnp.zeros((1, d_model), jnp.float32),
        }
        kidx += 7
        params["layers"].append(lp)
    return params


def encoder_forward_reference(src_seq, src_mask, packed, pos_table):
    B, S = src_seq.shape
    L = packed["wq"].shape[0]
    d_k = packed["wq"].shape[-1]
    inv_temp = 1.0 / (float(d_k) ** 0.5)
    pos = pos_table[:S]
    outs = []
    for b in range(B):
        x = jnp.take(packed["emb"], src_seq[b], axis=0)       # (S, D)
        x = _layernorm(x + pos, packed["ln0g"], packed["ln0b"])
        key_mask = src_mask[b][None]                           # (1, 1, S)
        for l in range(L):
            x = _encoder_layer(x, key_mask,
                               packed["wq"][l], packed["wk"][l],
                               packed["wv"][l], packed["wo"][l],
                               packed["ln1g"][l], packed["ln1b"][l],
                               packed["w1"][l], packed["b1"][l],
                               packed["w2"][l], packed["b2"][l],
                               packed["ln2g"][l], packed["ln2b"][l], inv_temp)
        outs.append(x)
    return jnp.stack(outs)


if __name__ == "__main__":
    # Small-shape config consistent with the module's constructor arguments.
    B, S = 2, 8
    n_vocab, pad_idx = 50, 0
    d_model = d_word_vec = 32
    n_layers, n_head, d_k, d_v, d_inner = 2, 4, 8, 8, 64
    n_position = 200

    key = jax.random.PRNGKey(0)
    k_seq, k_param = jax.random.split(key)

    src_seq = jax.random.randint(k_seq, (B, S), 1, n_vocab, dtype=jnp.int32)
    src_seq = src_seq.at[0, 6:].set(pad_idx).at[1, 5:].set(pad_idx)   # some padding
    src_mask = (src_seq != pad_idx).astype(jnp.float32)[:, None, :]   # (B,1,S)

    params = init_params(k_param, n_vocab, pad_idx, d_model,
                         n_layers, n_head, d_k, d_v, d_inner)
    pos_table = sinusoid_table(n_position, d_word_vec)
    packed = pack_params(params)

    out = encoder_forward_pallas(src_seq, src_mask, packed, pos_table)
    out = jax.block_until_ready(out)

    ref = encoder_forward_reference(src_seq, src_mask, packed, pos_table)
    ref = jax.block_until_ready(ref)

    assert out.shape == (B, S, d_model)
    # Kernel and reference share the exact same bf16-matmul / f32-accumulate
    # math (shared _encoder_layer) and an exact softmax, so they agree tightly.
    np.testing.assert_allclose(np.asarray(out), np.asarray(ref), rtol=2e-3, atol=2e-3)
    print("KERNEL_OK")
</pallas_src>

<mosaic_0001>
module attributes {stable_mosaic.version = 11 : i64} {
  func.func @kernel(%arg0: i32, %arg1: i32, %arg2: memref<2x8xi32, #tpu.memory_space<smem>>, %arg3: memref<1x1x8xf32, #tpu.memory_space<vmem>>, %arg4: memref<50x32xf32, #tpu.memory_space<vmem>>, %arg5: memref<8x32xf32, #tpu.memory_space<vmem>>, %arg6: memref<1x32xf32, #tpu.memory_space<vmem>>, %arg7: memref<1x32xf32, #tpu.memory_space<vmem>>, %arg8: memref<1x4x32x8xbf16, #tpu.memory_space<vmem>>, %arg9: memref<1x4x32x8xbf16, #tpu.memory_space<vmem>>, %arg10: memref<1x4x32x8xbf16, #tpu.memory_space<vmem>>, %arg11: memref<1x4x8x32xbf16, #tpu.memory_space<vmem>>, %arg12: memref<1x1x32xf32, #tpu.memory_space<vmem>>, %arg13: memref<1x1x32xf32, #tpu.memory_space<vmem>>, %arg14: memref<1x32x64xbf16, #tpu.memory_space<vmem>>, %arg15: memref<1x1x64xf32, #tpu.memory_space<vmem>>, %arg16: memref<1x64x32xbf16, #tpu.memory_space<vmem>>, %arg17: memref<1x1x32xf32, #tpu.memory_space<vmem>>, %arg18: memref<1x1x32xf32, #tpu.memory_space<vmem>>, %arg19: memref<1x1x32xf32, #tpu.memory_space<vmem>>, %arg20: memref<1x8x32xf32, #tpu.memory_space<vmem>>, %arg21: memref<8x32xf32, #tpu.memory_space<vmem>>) attributes {dimension_semantics = [#tpu.dimension_semantics<parallel>, #tpu.dimension_semantics<arbitrary>], iteration_bounds = array<i64: 2, 2>, scalar_prefetch = 1 : i64, scratch_operands = 1 : i64, tpu.core_type = #tpu.core_type<tc>, window_params = [{transform_indices = @transform_0, window_bounds = array<i64: 1, 1, 8>}, {pipeline_mode = #tpu.pipeline_mode<synchronous>, transform_indices = @transform_1, window_bounds = array<i64: 50, 32>}, {pipeline_mode = #tpu.pipeline_mode<synchronous>, transform_indices = @transform_2, window_bounds = array<i64: 8, 32>}, {pipeline_mode = #tpu.pipeline_mode<synchronous>, transform_indices = @transform_3, window_bounds = array<i64: 1, 32>}, {pipeline_mode = #tpu.pipeline_mode<synchronous>, transform_indices = @transform_4, window_bounds = array<i64: 1, 32>}, {transform_indices = @transform_5, window_bounds = array<i64: 1, 4, 32, 8>}, {transform_indices = @transform_6, window_bounds = array<i64: 1, 4, 32, 8>}, {transform_indices = @transform_7, window_bounds = array<i64: 1, 4, 32, 8>}, {transform_indices = @transform_8, window_bounds = array<i64: 1, 4, 8, 32>}, {transform_indices = @transform_9, window_bounds = array<i64: 1, 1, 32>}, {transform_indices = @transform_10, window_bounds = array<i64: 1, 1, 32>}, {transform_indices = @transform_11, window_bounds = array<i64: 1, 32, 64>}, {transform_indices = @transform_12, window_bounds = array<i64: 1, 1, 64>}, {transform_indices = @transform_13, window_bounds = array<i64: 1, 64, 32>}, {transform_indices = @transform_14, window_bounds = array<i64: 1, 1, 32>}, {transform_indices = @transform_15, window_bounds = array<i64: 1, 1, 32>}, {transform_indices = @transform_16, window_bounds = array<i64: 1, 1, 32>}, {transform_indices = @transform_17, window_bounds = array<i64: 1, 8, 32>}]} {
    %c0_i32 = arith.constant 0 : i32
    %0 = arith.cmpi eq, %arg1, %c0_i32 : i32
    %1 = arith.extui %0 : i1 to i32
    %c0_i32_0 = arith.constant 0 : i32
    %2 = arith.cmpi ne, %1, %c0_i32_0 : i32
    scf.if %2 {
      %122 = arith.index_cast %arg0 : i32 to index
      %c0_72 = arith.constant 0 : index
      %123 = memref.load %arg2[%122, %c0_72] : memref<2x8xi32, #tpu.memory_space<smem>>
      %124 = arith.index_cast %123 : i32 to index
      %c0_73 = arith.constant 0 : index
      %125 = vector.load %arg4[%124, %c0_73] : memref<50x32xf32, #tpu.memory_space<vmem>>, vector<1x32xf32>
      %c0_74 = arith.constant 0 : index
      %c0_75 = arith.constant 0 : index
      %126 = vector.load %arg21[%c0_74, %c0_75] : memref<8x32xf32, #tpu.memory_space<vmem>>, vector<1x32xf32>
      tpu.vector_store %arg21[%c0_74, %c0_75], %125 {strides = array<i32>} : memref<8x32xf32, #tpu.memory_space<vmem>>, vector<1x32xf32>,
      %127 = arith.index_cast %arg0 : i32 to index
      %c1 = arith.constant 1 : index
      %128 = memref.load %arg2[%127, %c1] : memref<2x8xi32, #tpu.memory_space<smem>>
      %129 = arith.index_cast %128 : i32 to index
      %c0_76 = arith.constant 0 : index
      %130 = vector.load %arg4[%129, %c0_76] : memref<50x32xf32, #tpu.memory_space<vmem>>, vector<1x32xf32>
      %c1_77 = arith.constant 1 : index
      %c0_78 = arith.constant 0 : index
      %131 = vector.load %arg21[%c1_77, %c0_78] : memref<8x32xf32, #tpu.memory_space<vmem>>, vector<1x32xf32>
      tpu.vector_store %arg21[%c1_77, %c0_78], %130 {strides = array<i32>} : memref<8x32xf32, #tpu.memory_space<vmem>>, vector<1x32xf32>,
      %132 = arith.index_cast %arg0 : i32 to index
      %c2 = arith.constant 2 : index
      %133 = memref.load %arg2[%132, %c2] : memref<2x8xi32, #tpu.memory_space<smem>>
      %134 = arith.index_cast %133 : i32 to index
      %c0_79 = arith.constant 0 : index
      %135 = vector.load %arg4[%134, %c0_79] : memref<50x32xf32, #tpu.memory_space<vmem>>, vector<1x32xf32>
      %c2_80 = arith.constant 2 : index
      %c0_81 = arith.constant 0 : index
      %136 = vector.load %arg21[%c2_80, %c0_81] : memref<8x32xf32, #tpu.memory_space<vmem>>, vector<1x32xf32>
      tpu.vector_store %arg21[%c2_80, %c0_81], %135 {strides = array<i32>} : memref<8x32xf32, #tpu.memory_space<vmem>>, vector<1x32xf32>,
      %137 = arith.index_cast %arg0 : i32 to index
      %c3 = arith.constant 3 : index
      %138 = memref.load %arg2[%137, %c3] : memref<2x8xi32, #tpu.memory_space<smem>>
      %139 = arith.index_cast %138 : i32 to index
      %c0_82 = arith.constant 0 : index
      %140 = vector.load %arg4[%139, %c0_82] : memref<50x32xf32, #tpu.memory_space<vmem>>, vector<1x32xf32>
      %c3_83 = arith.constant 3 : index
      %c0_84 = arith.constant 0 : index
      %141 = vector.load %arg21[%c3_83, %c0_84] : memref<8x32xf32, #tpu.memory_space<vmem>>, vector<1x32xf32>
      tpu.vector_store %arg21[%c3_83, %c0_84], %140 {strides = array<i32>} : memref<8x32xf32, #tpu.memory_space<vmem>>, vector<1x32xf32>,
      %142 = arith.index_cast %arg0 : i32 to index
      %c4 = arith.constant 4 : index
      %143 = memref.load %arg2[%142, %c4] : memref<2x8xi32, #tpu.memory_space<smem>>
      %144 = arith.index_cast %143 : i32 to index
      %c0_85 = arith.constant 0 : index
      %145 = vector.load %arg4[%144, %c0_85] : memref<50x32xf32, #tpu.memory_space<vmem>>, vector<1x32xf32>
      %c4_86 = arith.constant 4 : index
      %c0_87 = arith.constant 0 : index
      %146 = vector.load %arg21[%c4_86, %c0_87] : memref<8x32xf32, #tpu.memory_space<vmem>>, vector<1x32xf32>
      tpu.vector_store %arg21[%c4_86, %c0_87], %145 {strides = array<i32>} : memref<8x32xf32, #tpu.memory_space<vmem>>, vector<1x32xf32>,
      %147 = arith.index_cast %arg0 : i32 to index
      %c5 = arith.constant 5 : index
      %148 = memref.load %arg2[%147, %c5] : memref<2x8xi32, #tpu.memory_space<smem>>
      %149 = arith.index_cast %148 : i32 to index
      %c0_88 = arith.constant 0 : index
      %150 = vector.load %arg4[%149, %c0_88] : memref<50x32xf32, #tpu.memory_space<vmem>>, vector<1x32xf32>
      %c5_89 = arith.constant 5 : index
      %c0_90 = arith.constant 0 : index
      %151 = vector.load %arg21[%c5_89, %c0_90] : memref<8x32xf32, #tpu.memory_space<vmem>>, vector<1x32xf32>
      tpu.vector_store %arg21[%c5_89, %c0_90], %150 {strides = array<i32>} : memref<8x32xf32, #tpu.memory_space<vmem>>, vector<1x32xf32>,
      %152 = arith.index_cast %arg0 : i32 to index
      %c6 = arith.constant 6 : index
      %153 = memref.load %arg2[%152, %c6] : memref<2x8xi32, #tpu.memory_space<smem>>
      %154 = arith.index_cast %153 : i32 to index
      %c0_91 = arith.constant 0 : index
      %155 = vector.load %arg4[%154, %c0_91] : memref<50x32xf32, #tpu.memory_space<vmem>>, vector<1x32xf32>
      %c6_92 = arith.constant 6 : index
      %c0_93 = arith.constant 0 : index
      %156 = vector.load %arg21[%c6_92, %c0_93] : memref<8x32xf32, #tpu.memory_space<vmem>>, vector<1x32xf32>
      tpu.vector_store %arg21[%c6_92, %c0_93], %155 {strides = array<i32>} : memref<8x32xf32, #tpu.memory_space<vmem>>, vector<1x32xf32>,
      %157 = arith.index_cast %arg0 : i32 to index
      %c7 = arith.constant 7 : index
      %158 = memref.load %arg2[%157, %c7] : memref<2x8xi32, #tpu.memory_space<smem>>
      %159 = arith.index_cast %158 : i32 to index
      %c0_94 = arith.constant 0 : index
      %160 = vector.load %arg4[%159, %c0_94] : memref<50x32xf32, #tpu.memory_space<vmem>>, vector<1x32xf32>
      %c7_95 = arith.constant 7 : index
      %c0_96 = arith.constant 0 : index
      %161 = vector.load %arg21[%c7_95, %c0_96] : memref<8x32xf32, #tpu.memory_space<vmem>>, vector<1x32xf32>
      tpu.vector_store %arg21[%c7_95, %c0_96], %160 {strides = array<i32>} : memref<8x32xf32, #tpu.memory_space<vmem>>, vector<1x32xf32>,
      %c0_97 = arith.constant 0 : index
      %c0_98 = arith.constant 0 : index
      %162 = vector.load %arg21[%c0_97, %c0_98] : memref<8x32xf32, #tpu.memory_space<vmem>>, vector<8x32xf32>
      %c0_99 = arith.constant 0 : index
      %c0_100 = arith.constant 0 : index
      %163 = vector.load %arg5[%c0_99, %c0_100] : memref<8x32xf32, #tpu.memory_space<vmem>>, vector<8x32xf32>
      %164 = arith.addf %162, %163 : vector<8x32xf32>
      %c0_101 = arith.constant 0 : index
      %c0_102 = arith.constant 0 : index
      %165 = vector.load %arg6[%c0_101, %c0_102] : memref<1x32xf32, #tpu.memory_space<vmem>>, vector<1x32xf32>
      %c0_103 = arith.constant 0 : index
      %c0_104 = arith.constant 0 : index
      %166 = vector.load %arg7[%c0_103, %c0_104] : memref<1x32xf32, #tpu.memory_space<vmem>>, vector<1x32xf32>
      %cst_105 = arith.constant dense<0.000000e+00> : vector<8xf32>
      %167 = vector.multi_reduction <add>, %164, %cst_105 [1] : vector<8x32xf32> to vector<8xf32>
      %168 = vector.shape_cast %167 : vector<8xf32> to vector<8x1xf32>
      %cst_106 = arith.constant 3.200000e+01 : f32
      %169 = vector.broadcast %cst_106 : f32 to vector<8x1xf32>
      %170 = arith.divf %168, %169 : vector<8x1xf32>
      %171 = vector.broadcast %170 : vector<8x1xf32> to vector<8x32xf32>
      %172 = arith.subf %164, %171 : vector<8x32xf32>
      %173 = arith.mulf %172, %172 : vector<8x32xf32>
      %cst_107 = arith.constant dense<0.000000e+00> : vector<8xf32>
      %174 = vector.multi_reduction <add>, %173, %cst_107 [1] : vector<8x32xf32> to vector<8xf32>
      %175 = vector.shape_cast %174 : vector<8xf32> to vector<8x1xf32>
      %cst_108 = arith.constant 3.200000e+01 : f32
      %176 = vector.broadcast %cst_108 : f32 to vector<8x1xf32>
      %177 = arith.divf %175, %176 : vector<8x1xf32>
      %178 = vector.broadcast %170 : vector<8x1xf32> to vector<8x32xf32>
      %179 = arith.subf %164, %178 : vector<8x32xf32>
      %cst_109 = arith.constant 9.99999997E-7 : f32
      %180 = vector.broadcast %cst_109 : f32 to vector<8x1xf32>
      %181 = arith.addf %177, %180 : vector<8x1xf32>
      %182 = math.rsqrt %181 : vector<8x1xf32>
      %183 = vector.broadcast %182 : vector<8x1xf32> to vector<8x32xf32>
      %184 = arith.mulf %179, %183 : vector<8x32xf32>
      %185 = vector.broadcast %165 : vector<1x32xf32> to vector<8x32xf32>
      %186 = arith.mulf %184, %185 : vector<8x32xf32>
      %187 = vector.broadcast %166 : vector<1x32xf32> to vector<8x32xf32>
      %188 = arith.addf %186, %187 : vector<8x32xf32>
      %c0_110 = arith.constant 0 : index
      %c0_111 = arith.constant 0 : index
      %189 = vector.load %arg21[%c0_110, %c0_111] : memref<8x32xf32, #tpu.memory_space<vmem>>, vector<8x32xf32>
      tpu.vector_store %arg21[%c0_110, %c0_111], %188 {strides = array<i32>} : memref<8x32xf32, #tpu.memory_space<vmem>>, vector<8x32xf32>,
    } else {
    }
    %c0 = arith.constant 0 : index
    %c0_1 = arith.constant 0 : index
    %3 = vector.load %arg21[%c0, %c0_1] : memref<8x32xf32, #tpu.memory_space<vmem>>, vector<8x32xf32>
    %c0_2 = arith.constant 0 : index
    %c0_3 = arith.constant 0 : index
    %c0_4 = arith.constant 0 : index
    %4 = vector.load %arg3[%c0_2, %c0_3, %c0_4] : memref<1x1x8xf32, #tpu.memory_space<vmem>>, vector<1x1x8xf32>
    %c0_5 = arith.constant 0 : index
    %c0_6 = arith.constant 0 : index
    %c0_7 = arith.constant 0 : index
    %c0_8 = arith.constant 0 : index
    %5 = vector.load %arg8[%c0_5, %c0_6, %c0_7, %c0_8] : memref<1x4x32x8xbf16, #tpu.memory_space<vmem>>, vector<1x4x32x8xbf16>
    %6 = vector.shape_cast %5 : vector<1x4x32x8xbf16> to vector<4x32x8xbf16>
    %c0_9 = arith.constant 0 : index
    %c0_10 = arith.constant 0 : index
    %c0_11 = arith.constant 0 : index
    %c0_12 = arith.constant 0 : index
    %7 = vector.load %arg9[%c0_9, %c0_10, %c0_11, %c0_12] : memref<1x4x32x8xbf16, #tpu.memory_space<vmem>>, vector<1x4x32x8xbf16>
    %8 = vector.shape_cast %7 : vector<1x4x32x8xbf16> to vector<4x32x8xbf16>
    %c0_13 = arith.constant 0 : index
    %c0_14 = arith.constant 0 : index
    %c0_15 = arith.constant 0 : index
    %c0_16 = arith.constant 0 : index
    %9 = vector.load %arg10[%c0_13, %c0_14, %c0_15, %c0_16] : memref<1x4x32x8xbf16, #tpu.memory_space<vmem>>, vector<1x4x32x8xbf16>
    %10 = vector.shape_cast %9 : vector<1x4x32x8xbf16> to vector<4x32x8xbf16>
    %c0_17 = arith.constant 0 : index
    %c0_18 = arith.constant 0 : index
    %c0_19 = arith.constant 0 : index
    %c0_20 = arith.constant 0 : index
    %11 = vector.load %arg11[%c0_17, %c0_18, %c0_19, %c0_20] : memref<1x4x8x32xbf16, #tpu.memory_space<vmem>>, vector<1x4x8x32xbf16>
    %12 = vector.shape_cast %11 : vector<1x4x8x32xbf16> to vector<4x8x32xbf16>
    %c0_21 = arith.constant 0 : index
    %c0_22 = arith.constant 0 : index
    %c0_23 = arith.constant 0 : index
    %13 = vector.load %arg12[%c0_21, %c0_22, %c0_23] : memref<1x1x32xf32, #tpu.memory_space<vmem>>, vector<1x1x32xf32>
    %14 = vector.shape_cast %13 : vector<1x1x32xf32> to vector<1x32xf32>
    %c0_24 = arith.constant 0 : index
    %c0_25 = arith.constant 0 : index
    %c0_26 = arith.constant 0 : index
    %15 = vector.load %arg13[%c0_24, %c0_25, %c0_26] : memref<1x1x32xf32, #tpu.memory_space<vmem>>, vector<1x1x32xf32>
    %16 = vector.shape_cast %15 : vector<1x1x32xf32> to vector<1x32xf32>
    %c0_27 = arith.constant 0 : index
    %c0_28 = arith.constant 0 : index
    %c0_29 = arith.constant 0 : index
    %17 = vector.load %arg14[%c0_27, %c0_28, %c0_29] : memref<1x32x64xbf16, #tpu.memory_space<vmem>>, vector<1x32x64xbf16>
    %18 = vector.shape_cast %17 : vector<1x32x64xbf16> to vector<32x64xbf16>
    %c0_30 = arith.constant 0 : index
    %c0_31 = arith.constant 0 : index
    %c0_32 = arith.constant 0 : index
    %19 = vector.load %arg15[%c0_30, %c0_31, %c0_32] : memref<1x1x64xf32, #tpu.memory_space<vmem>>, vector<1x1x64xf32>
    %20 = vector.shape_cast %19 : vector<1x1x64xf32> to vector<1x64xf32>
    %c0_33 = arith.constant 0 : index
    %c0_34 = arith.constant 0 : index
    %c0_35 = arith.constant 0 : index
    %21 = vector.load %arg16[%c0_33, %c0_34, %c0_35] : memref<1x64x32xbf16, #tpu.memory_space<vmem>>, vector<1x64x32xbf16>
    %22 = vector.shape_cast %21 : vector<1x64x32xbf16> to vector<64x32xbf16>
    %c0_36 = arith.constant 0 : index
    %c0_37 = arith.constant 0 : index
    %c0_38 = arith.constant 0 : index
    %23 = vector.load %arg17[%c0_36, %c0_37, %c0_38] : memref<1x1x32xf32, #tpu.memory_space<vmem>>, vector<1x1x32xf32>
    %24 = vector.shape_cast %23 : vector<1x1x32xf32> to vector<1x32xf32>
    %c0_39 = arith.constant 0 : index
    %c0_40 = arith.constant 0 : index
    %c0_41 = arith.constant 0 : index
    %25 = vector.load %arg18[%c0_39, %c0_40, %c0_41] : memref<1x1x32xf32, #tpu.memory_space<vmem>>, vector<1x1x32xf32>
    %26 = vector.shape_cast %25 : vector<1x1x32xf32> to vector<1x32xf32>
    %c0_42 = arith.constant 0 : index
    %c0_43 = arith.constant 0 : index
    %c0_44 = arith.constant 0 : index
    %27 = vector.load %arg19[%c0_42, %c0_43, %c0_44] : memref<1x1x32xf32, #tpu.memory_space<vmem>>, vector<1x1x32xf32>
    %28 = vector.shape_cast %27 : vector<1x1x32xf32> to vector<1x32xf32>
    %29 = arith.truncf %3 : vector<8x32xf32> to vector<8x32xbf16>
    %30 = vector.shape_cast %29 : vector<8x32xbf16> to vector<1x8x32xbf16>
    %31 = vector.shape_cast %30 : vector<1x8x32xbf16> to vector<1x8x32xbf16>
    %32 = vector.broadcast %31 : vector<1x8x32xbf16> to vector<4x8x32xbf16>
    "tpu.trace_start"() <{level = 10 : i32, message = "hsd,hdk->hsk"}> : () -> ()
    %cst = arith.constant dense<0.000000e+00> : vector<4x8x8xf32>
    %33 = tpu.matmul %32, %6, %cst {dimension_numbers = #tpu.dot_dimension_numbers<[2], [1], [1], [2], [0, 0, 0, 1, 1, 2], [0], [0]>} : vector<4x8x32xbf16>, vector<4x32x8xbf16>, vector<4x8x8xf32> -> vector<4x8x8xf32>
    %cst_45 = arith.constant dense<0.000000e+00> : vector<4x8x8xf32>
    %34 = tpu.matmul %32, %8, %cst_45 {dimension_numbers = #tpu.dot_dimension_numbers<[2], [1], [1], [2], [0, 0, 0, 1, 1, 2], [0], [0]>} : vector<4x8x32xbf16>, vector<4x32x8xbf16>, vector<4x8x8xf32> -> vector<4x8x8xf32>
    "tpu.trace_stop"() : () -> ()
    "tpu.trace_start"() <{level = 10 : i32, message = "hsd,hdv->hsv"}> : () -> ()
    %cst_46 = arith.constant dense<0.000000e+00> : vector<4x8x8xf32>
    %35 = tpu.matmul %32, %10, %cst_46 {dimension_numbers = #tpu.dot_dimension_numbers<[2], [1], [1], [2], [0, 0, 0, 1, 1, 2], [0], [0]>} : vector<4x8x32xbf16>, vector<4x32x8xbf16>, vector<4x8x8xf32> -> vector<4x8x8xf32>
    "tpu.trace_stop"() : () -> ()
    %36 = arith.truncf %33 : vector<4x8x8xf32> to vector<4x8x8xbf16>
    %37 = arith.truncf %34 : vector<4x8x8xf32> to vector<4x8x8xbf16>
    "tpu.trace_start"() <{level = 10 : i32, message = "hqc,hkc->hqk"}> : () -> ()
    %cst_47 = arith.constant dense<0.000000e+00> : vector<4x8x8xf32>
    %38 = tpu.matmul %36, %37, %cst_47 {dimension_numbers = #tpu.dot_dimension_numbers<[2], [2], [1], [1], [0, 0, 0, 1, 1, 1], [0], [0]>} : vector<4x8x8xbf16>, vector<4x8x8xbf16>, vector<4x8x8xf32> -> vector<4x8x8xf32>
    "tpu.trace_stop"() : () -> ()
    %cst_48 = arith.constant 0.353553385 : f32
    %39 = vector.broadcast %cst_48 : f32 to vector<4x8x8xf32>
    %40 = arith.mulf %38, %39 : vector<4x8x8xf32>
    %cst_49 = arith.constant 0.000000e+00 : f32
    %41 = vector.broadcast %cst_49 : f32 to vector<1x1x8xf32>
    %42 = arith.cmpf oeq, %4, %41 : vector<1x1x8xf32>
    %cst_50 = arith.constant -1.000000e+09 : f32
    %43 = vector.shape_cast %42 : vector<1x1x8xi1> to vector<1x1x8xi1>
    %44 = vector.broadcast %43 : vector<1x1x8xi1> to vector<4x8x8xi1>
    %45 = vector.broadcast %cst_50 : f32 to vector<4x8x8xf32>
    %46 = arith.select %44, %45, %40 : vector<4x8x8xi1>, vector<4x8x8xf32>
    %cst_51 = arith.constant dense<0xFF800000> : vector<4x8xf32>
    %47 = vector.multi_reduction <maximumf>, %46, %cst_51 [2] : vector<4x8x8xf32> to vector<4x8xf32>
    %48 = vector.shape_cast %47 : vector<4x8xf32> to vector<4x8x1xf32>
    %49 = vector.broadcast %48 : vector<4x8x1xf32> to vector<4x8x8xf32>
    %50 = arith.subf %46, %49 : vector<4x8x8xf32>
    %51 = math.exp %50 : vector<4x8x8xf32>
    %cst_52 = arith.constant dense<0.000000e+00> : vector<4x8xf32>
    %52 = vector.multi_reduction <add>, %51, %cst_52 [2] : vector<4x8x8xf32> to vector<4x8xf32>
    %53 = vector.shape_cast %52 : vector<4x8xf32> to vector<4x8x1xf32>
    %54 = vector.broadcast %53 : vector<4x8x1xf32> to vector<4x8x8xf32>
    %55 = arith.divf %51, %54 : vector<4x8x8xf32>
    %56 = arith.truncf %55 : vector<4x8x8xf32> to vector<4x8x8xbf16>
    %57 = arith.truncf %35 : vector<4x8x8xf32> to vector<4x8x8xbf16>
    "tpu.trace_start"() <{level = 10 : i32, message = "hqk,hkv->hqv"}> : () -> ()
    %cst_53 = arith.constant dense<0.000000e+00> : vector<4x8x8xf32>
    %58 = tpu.matmul %56, %57, %cst_53 {dimension_numbers = #tpu.dot_dimension_numbers<[2], [1], [1], [2], [0, 0, 0, 1, 1, 2], [0], [0]>} : vector<4x8x8xbf16>, vector<4x8x8xbf16>, vector<4x8x8xf32> -> vector<4x8x8xf32>
    "tpu.trace_stop"() : () -> ()
    %59 = arith.truncf %58 : vector<4x8x8xf32> to vector<4x8x8xbf16>
    "tpu.trace_start"() <{level = 10 : i32, message = "hqv,hvd->hqd"}> : () -> ()
    %cst_54 = arith.constant dense<0.000000e+00> : vector<4x8x32xf32>
    %60 = tpu.matmul %59, %12, %cst_54 {dimension_numbers = #tpu.dot_dimension_numbers<[2], [1], [1], [2], [0, 0, 0, 1, 1, 2], [0], [0]>} : vector<4x8x8xbf16>, vector<4x8x32xbf16>, vector<4x8x32xf32> -> vector<4x8x32xf32>
    "tpu.trace_stop"() : () -> ()
    %cst_55 = arith.constant dense<0.000000e+00> : vector<8x32xf32>
    %61 = vector.multi_reduction <add>, %60, %cst_55 [0] : vector<4x8x32xf32> to vector<8x32xf32>
    %62 = arith.addf %61, %3 : vector<8x32xf32>
    %cst_56 = arith.constant dense<0.000000e+00> : vector<8xf32>
    %63 = vector.multi_reduction <add>, %62, %cst_56 [1] : vector<8x32xf32> to vector<8xf32>
    %64 = vector.shape_cast %63 : vector<8xf32> to vector<8x1xf32>
    %cst_57 = arith.constant 3.200000e+01 : f32
    %65 = vector.broadcast %cst_57 : f32 to vector<8x1xf32>
    %66 = arith.divf %64, %65 : vector<8x1xf32>
    %67 = vector.broadcast %66 : vector<8x1xf32> to vector<8x32xf32>
    %68 = arith.subf %62, %67 : vector<8x32xf32>
    %69 = arith.mulf %68, %68 : vector<8x32xf32>
    %cst_58 = arith.constant dense<0.000000e+00> : vector<8xf32>
    %70 = vector.multi_reduction <add>, %69, %cst_58 [1] : vector<8x32xf32> to vector<8xf32>
    %71 = vector.shape_cast %70 : vector<8xf32> to vector<8x1xf32>
    %cst_59 = arith.constant 3.200000e+01 : f32
    %72 = vector.broadcast %cst_59 : f32 to vector<8x1xf32>
    %73 = arith.divf %71, %72 : vector<8x1xf32>
    %74 = vector.broadcast %66 : vector<8x1xf32> to vector<8x32xf32>
    %75 = arith.subf %62, %74 : vector<8x32xf32>
    %cst_60 = arith.constant 9.99999997E-7 : f32
    %76 = vector.broadcast %cst_60 : f32 to vector<8x1xf32>
    %77 = arith.addf %73, %76 : vector<8x1xf32>
    %78 = math.rsqrt %77 : vector<8x1xf32>
    %79 = vector.broadcast %78 : vector<8x1xf32> to vector<8x32xf32>
    %80 = arith.mulf %75, %79 : vector<8x32xf32>
    %81 = vector.broadcast %14 : vector<1x32xf32> to vector<8x32xf32>
    %82 = arith.mulf %80, %81 : vector<8x32xf32>
    %83 = vector.broadcast %16 : vector<1x32xf32> to vector<8x32xf32>
    %84 = arith.addf %82, %83 : vector<8x32xf32>
    %85 = arith.truncf %84 : vector<8x32xf32> to vector<8x32xbf16>
    %cst_61 = arith.constant dense<0.000000e+00> : vector<8x64xf32>
    %86 = tpu.matmul %85, %18, %cst_61 {dimension_numbers = #tpu.dot_dimension_numbers<[1], [0], [0], [1], [0, 0, 1, 1], [], []>} : vector<8x32xbf16>, vector<32x64xbf16>, vector<8x64xf32> -> vector<8x64xf32>
    %87 = vector.broadcast %20 : vector<1x64xf32> to vector<8x64xf32>
    %88 = arith.addf %86, %87 : vector<8x64xf32>
    %cst_62 = arith.constant 0.000000e+00 : f32
    %89 = vector.broadcast %cst_62 : f32 to vector<8x64xf32>
    %90 = arith.maximumf %88, %89 : vector<8x64xf32>
    %91 = arith.truncf %90 : vector<8x64xf32> to vector<8x64xbf16>
    %cst_63 = arith.constant dense<0.000000e+00> : vector<8x32xf32>
    %92 = tpu.matmul %91, %22, %cst_63 {dimension_numbers = #tpu.dot_dimension_numbers<[1], [0], [0], [1], [0, 0, 1, 1], [], []>} : vector<8x64xbf16>, vector<64x32xbf16>, vector<8x32xf32> -> vector<8x32xf32>
    %93 = vector.broadcast %24 : vector<1x32xf32> to vector<8x32xf32>
    %94 = arith.addf %92, %93 : vector<8x32xf32>
    %95 = arith.addf %94, %84 : vector<8x32xf32>
    %cst_64 = arith.constant dense<0.000000e+00> : vector<8xf32>
    %96 = vector.multi_reduction <add>, %95, %cst_64 [1] : vector<8x32xf32> to vector<8xf32>
    %97 = vector.shape_cast %96 : vector<8xf32> to vector<8x1xf32>
    %cst_65 = arith.constant 3.200000e+01 : f32
    %98 = vector.broadcast %cst_65 : f32 to vector<8x1xf32>
    %99 = arith.divf %97, %98 : vector<8x1xf32>
    %100 = vector.broadcast %99 : vector<8x1xf32> to vector<8x32xf32>
    %101 = arith.subf %95, %100 : vector<8x32xf32>
    %102 = arith.mulf %101, %101 : vector<8x32xf32>
    %cst_66 = arith.constant dense<0.000000e+00> : vector<8xf32>
    %103 = vector.multi_reduction <add>, %102, %cst_66 [1] : vector<8x32xf32> to vector<8xf32>
    %104 = vector.shape_cast %103 : vector<8xf32> to vector<8x1xf32>
    %cst_67 = arith.constant 3.200000e+01 : f32
    %105 = vector.broadcast %cst_67 : f32 to vector<8x1xf32>
    %106 = arith.divf %104, %105 : vector<8x1xf32>
    %107 = vector.broadcast %99 : vector<8x1xf32> to vector<8x32xf32>
    %108 = arith.subf %95, %107 : vector<8x32xf32>
    %cst_68 = arith.constant 9.99999997E-7 : f32
    %109 = vector.broadcast %cst_68 : f32 to vector<8x1xf32>
    %110 = arith.addf %106, %109 : vector<8x1xf32>
    %111 = math.rsqrt %110 : vector<8x1xf32>
    %112 = vector.broadcast %111 : vector<8x1xf32> to vector<8x32xf32>
    %113 = arith.mulf %108, %112 : vector<8x32xf32>
    %114 = vector.broadcast %26 : vector<1x32xf32> to vector<8x32xf32>
    %115 = arith.mulf %113, %114 : vector<8x32xf32>
    %116 = vector.broadcast %28 : vector<1x32xf32> to vector<8x32xf32>
    %117 = arith.addf %115, %116 : vector<8x32xf32>
    %c0_69 = arith.constant 0 : index
    %c0_70 = arith.constant 0 : index
    %118 = vector.load %arg21[%c0_69, %c0_70] : memref<8x32xf32, #tpu.memory_space<vmem>>, vector<8x32xf32>
    tpu.vector_store %arg21[%c0_69, %c0_70], %117 {strides = array<i32>} : memref<8x32xf32, #tpu.memory_space<vmem>>, vector<8x32xf32>,
    %c1_i32 = arith.constant 1 : i32
    %119 = arith.cmpi eq, %arg1, %c1_i32 : i32
    %120 = arith.extui %119 : i1 to i32
    %c0_i32_71 = arith.constant 0 : i32
    %121 = arith.cmpi ne, %120, %c0_i32_71 : i32
    scf.if %121 {
      %c0_72 = arith.constant 0 : index
      %c0_73 = arith.constant 0 : index
      %c0_74 = arith.constant 0 : index
      %122 = vector.load %arg20[%c0_72, %c0_73, %c0_74] : memref<1x8x32xf32, #tpu.memory_space<vmem>>, vector<1x8x32xf32>
      %123 = vector.shape_cast %122 : vector<1x8x32xf32> to vector<8x32xf32>
      %124 = vector.shape_cast %117 : vector<8x32xf32> to vector<1x8x32xf32>
      tpu.vector_store %arg20[%c0_72, %c0_73, %c0_74], %124 {strides = array<i32>} : memref<1x8x32xf32, #tpu.memory_space<vmem>>, vector<1x8x32xf32>,
    } else {
    }
    return
  }
  func.func @transform_0(%arg0: i32, %arg1: i32, %arg2: memref<2x8xi32, #tpu.memory_space<smem>>) -> (i32, i32, i32) {
    %c0_i32 = arith.constant 0 : i32
    %c0_i32_0 = arith.constant 0 : i32
    %c0_i32_1 = arith.constant 0 : i32
    return %arg0, %c0_i32, %c0_i32_0 : i32, i32, i32
  }
  func.func @transform_1(%arg0: i32, %arg1: i32, %arg2: memref<2x8xi32, #tpu.memory_space<smem>>) -> (i32, i32) {
    %c0_i32 = arith.constant 0 : i32
    %c0_i32_0 = arith.constant 0 : i32
    %c0_i32_1 = arith.constant 0 : i32
    return %c0_i32, %c0_i32_0 : i32, i32
  }
  func.func @transform_2(%arg0: i32, %arg1: i32, %arg2: memref<2x8xi32, #tpu.memory_space<smem>>) -> (i32, i32) {
    %c0_i32 = arith.constant 0 : i32
    %c0_i32_0 = arith.constant 0 : i32
    %c0_i32_1 = arith.constant 0 : i32
    return %c0_i32, %c0_i32_0 : i32, i32
  }
  func.func @transform_3(%arg0: i32, %arg1: i32, %arg2: memref<2x8xi32, #tpu.memory_space<smem>>) -> (i32, i32) {
    %c0_i32 = arith.constant 0 : i32
    %c0_i32_0 = arith.constant 0 : i32
    %c0_i32_1 = arith.constant 0 : i32
    return %c0_i32, %c0_i32_0 : i32, i32
  }
  func.func @transform_4(%arg0: i32, %arg1: i32, %arg2: memref<2x8xi32, #tpu.memory_space<smem>>) -> (i32, i32) {
    %c0_i32 = arith.constant 0 : i32
    %c0_i32_0 = arith.constant 0 : i32
    %c0_i32_1 = arith.constant 0 : i32
    return %c0_i32, %c0_i32_0 : i32, i32
  }
  func.func @transform_5(%arg0: i32, %arg1: i32, %arg2: memref<2x8xi32, #tpu.memory_space<smem>>) -> (i32, i32, i32, i32) {
    %c0_i32 = arith.constant 0 : i32
    %c0_i32_0 = arith.constant 0 : i32
    %c0_i32_1 = arith.constant 0 : i32
    %c0_i32_2 = arith.constant 0 : i32
    return %arg1, %c0_i32, %c0_i32_0, %c0_i32_1 : i32, i32, i32, i32
  }
  func.func @transform_6(%arg0: i32, %arg1: i32, %arg2: memref<2x8xi32, #tpu.memory_space<smem>>) -> (i32, i32, i32, i32) {
    %c0_i32 = arith.constant 0 : i32
    %c0_i32_0 = arith.constant 0 : i32
    %c0_i32_1 = arith.constant 0 : i32
    %c0_i32_2 = arith.constant 0 : i32
    return %arg1, %c0_i32, %c0_i32_0, %c0_i32_1 : i32, i32, i32, i32
  }
  func.func @transform_7(%arg0: i32, %arg1: i32, %arg2: memref<2x8xi32, #tpu.memory_space<smem>>) -> (i32, i32, i32, i32) {
    %c0_i32 = arith.constant 0 : i32
    %c0_i32_0 = arith.constant 0 : i32
    %c0_i32_1 = arith.constant 0 : i32
    %c0_i32_2 = arith.constant 0 : i32
    return %arg1, %c0_i32, %c0_i32_0, %c0_i32_1 : i32, i32, i32, i32
  }
  func.func @transform_8(%arg0: i32, %arg1: i32, %arg2: memref<2x8xi32, #tpu.memory_space<smem>>) -> (i32, i32, i32, i32) {
    %c0_i32 = arith.constant 0 : i32
    %c0_i32_0 = arith.constant 0 : i32
    %c0_i32_1 = arith.constant 0 : i32
    %c0_i32_2 = arith.constant 0 : i32
    return %arg1, %c0_i32, %c0_i32_0, %c0_i32_1 : i32, i32, i32, i32
  }
  func.func @transform_9(%arg0: i32, %arg1: i32, %arg2: memref<2x8xi32, #tpu.memory_space<smem>>) -> (i32, i32, i32) {
    %c0_i32 = arith.constant 0 : i32
    %c0_i32_0 = arith.constant 0 : i32
    %c0_i32_1 = arith.constant 0 : i32
    return %arg1, %c0_i32, %c0_i32_0 : i32, i32, i32
  }
  func.func @transform_10(%arg0: i32, %arg1: i32, %arg2: memref<2x8xi32, #tpu.memory_space<smem>>) -> (i32, i32, i32) {
    %c0_i32 = arith.constant 0 : i32
    %c0_i32_0 = arith.constant 0 : i32
    %c0_i32_1 = arith.constant 0 : i32
    return %arg1, %c0_i32, %c0_i32_0 : i32, i32, i32
  }
  func.func @transform_11(%arg0: i32, %arg1: i32, %arg2: memref<2x8xi32, #tpu.memory_space<smem>>) -> (i32, i32, i32) {
    %c0_i32 = arith.constant 0 : i32
    %c0_i32_0 = arith.constant 0 : i32
    %c0_i32_1 = arith.constant 0 : i32
    return %arg1, %c0_i32, %c0_i32_0 : i32, i32, i32
  }
  func.func @transform_12(%arg0: i32, %arg1: i32, %arg2: memref<2x8xi32, #tpu.memory_space<smem>>) -> (i32, i32, i32) {
    %c0_i32 = arith.constant 0 : i32
    %c0_i32_0 = arith.constant 0 : i32
    %c0_i32_1 = arith.constant 0 : i32
    return %arg1, %c0_i32, %c0_i32_0 : i32, i32, i32
  }
  func.func @transform_13(%arg0: i32, %arg1: i32, %arg2: memref<2x8xi32, #tpu.memory_space<smem>>) -> (i32, i32, i32) {
    %c0_i32 = arith.constant 0 : i32
    %c0_i32_0 = arith.constant 0 : i32
    %c0_i32_1 = arith.constant 0 : i32
    return %arg1, %c0_i32, %c0_i32_0 : i32, i32, i32
  }
  func.func @transform_14(%arg0: i32, %arg1: i32, %arg2: memref<2x8xi32, #tpu.memory_space<smem>>) -> (i32, i32, i32) {
    %c0_i32 = arith.constant 0 : i32
    %c0_i32_0 = arith.constant 0 : i32
    %c0_i32_1 = arith.constant 0 : i32
    return %arg1, %c0_i32, %c0_i32_0 : i32, i32, i32
  }
  func.func @transform_15(%arg0: i32, %arg1: i32, %arg2: memref<2x8xi32, #tpu.memory_space<smem>>) -> (i32, i32, i32) {
    %c0_i32 = arith.constant 0 : i32
    %c0_i32_0 = arith.constant 0 : i32
    %c0_i32_1 = arith.constant 0 : i32
    return %arg1, %c0_i32, %c0_i32_0 : i32, i32, i32
  }
  func.func @transform_16(%arg0: i32, %arg1: i32, %arg2: memref<2x8xi32, #tpu.memory_space<smem>>) -> (i32, i32, i32) {
    %c0_i32 = arith.constant 0 : i32
    %c0_i32_0 = arith.constant 0 : i32
    %c0_i32_1 = arith.constant 0 : i32
    return %arg1, %c0_i32, %c0_i32_0 : i32, i32, i32
  }
  func.func @transform_17(%arg0: i32, %arg1: i32, %arg2: memref<2x8xi32, #tpu.memory_space<smem>>) -> (i32, i32, i32) {
    %c0_i32 = arith.constant 0 : i32
    %c0_i32_0 = arith.constant 0 : i32
    %c0_i32_1 = arith.constant 0 : i32
    return %arg0, %c0_i32, %c0_i32_0 : i32, i32, i32
  }
}

</mosaic_0001>

<bundles_post_ra>
// kernel: tpu_custom_call.1
= control target key start
LH: loop header
LB: loop body
LE: loop exit
PB: predicated region body
PF: predicated region fallthrough
CT: control target
= control target key end

     0   :  { %s3781_s0 = inlined_call_operand.vmem [shape: s32[2,8], index: 0, kind: input, shape index: {}]   ;;  %s3782_s1 = inlined_call_operand.vmem [shape: f32[2,1,8], index: 1, kind: input, shape index: {}]   ;;  %s3783_s2 = inlined_call_operand.vmem [shape: f32[50,32], index: 2, kind: input, shape index: {}]   ;;  %s3784_s3 = inlined_call_operand.vmem [shape: f32[8,32], index: 3, kind: input, shape index: {}]   ;;  %s3785_s4 = inlined_call_operand.vmem [shape: f32[1,32], index: 4, kind: input, shape index: {}]   ;;  %s3786_s5 = inlined_call_operand.vmem [shape: f32[1,32], index: 5, kind: input, shape index: {}]   ;;  %s3787_s6 = inlined_call_operand.vmem [shape: bf16[2,4,32,8], index: 6, kind: input, shape index: {}]   ;;  %s3788_s7 = inlined_call_operand.vmem [shape: bf16[2,4,32,8], index: 7, kind: input, shape index: {}]   ;;  %s3789_s8 = inlined_call_operand.vmem [shape: bf16[2,4,32,8], index: 8, kind: input, shape index: {}]   ;;  %s3790_s9 = inlined_call_operand.vmem [shape: bf16[2,4,8,32], index: 9, kind: input, shape index: {}]   ;;  %s3791_s10 = inlined_call_operand.vmem [shape: f32[2,1,32], index: 10, kind: input, shape index: {}]   ;;  %s3792_s11 = inlined_call_operand.vmem [shape: f32[2,1,32], index: 11, kind: input, shape index: {}]   ;;  %s3793_s12 = inlined_call_operand.vmem [shape: bf16[2,32,64], index: 12, kind: input, shape index: {}]   ;;  %s3794_s13 = inlined_call_operand.vmem [shape: f32[2,1,64], index: 13, kind: input, shape index: {}]   ;;  %s3795_s14 = inlined_call_operand.vmem [shape: bf16[2,64,32], index: 14, kind: input, shape index: {}]   ;;  %s3796_s15 = inlined_call_operand.vmem [shape: f32[2,1,32], index: 15, kind: input, shape index: {}]   ;;  %s3797_s16 = inlined_call_operand.vmem [shape: f32[2,1,32], index: 16, kind: input, shape index: {}]   ;;  %s3798_s17 = inlined_call_operand.vmem [shape: f32[2,1,32], index: 17, kind: input, shape index: {}]   ;;  %s3799_s18 = inlined_call_operand.hbm [shape: f32[2,8,32], index: 18, kind: output, shape index: {}]  }
   0x1   :  { %3819 = sst [smem:[#allocation25_spill]] %s3781_s0 }
   0x2   :  { %3820 = sst [smem:[#allocation26_spill]] %s3782_s1 }
   0x3   :  { %3821 = sst [smem:[#allocation27_spill]] %s3783_s2 }
   0x4   :  { %3822 = sst [smem:[#allocation28_spill]] %s3784_s3 }
   0x5   :  { %3823 = sst [smem:[#allocation29_spill]] %s3785_s4 }
   0x6   :  { %3824 = sst [smem:[#allocation30_spill]] %s3786_s5 }
   0x7   :  { %3825 = sst [smem:[#allocation31_spill]] %s3787_s6 }
   0x8   :  { %3826 = sst [smem:[#allocation32_spill]] %s3788_s7 }
   0x9   :  { %3827 = sst [smem:[#allocation33_spill]] %s3789_s8 }
   0xa   :  { %3828 = sst [smem:[#allocation34_spill]] %s3790_s9 }
   0xb   :  { %3829 = sst [smem:[#allocation35_spill]] %s3793_s12 }
   0xc   :  { %3830 = sst [smem:[#allocation36_spill]] %s3795_s14 }
   0xd   :  { %3831 = sst [smem:[#allocation37_spill]] %s3797_s16 }
   0xe   :  { %3832 = sst [smem:[#allocation38_spill]] %s3798_s17 }
   0xf   :  { %3833 = sst [smem:[#allocation39_spill]] %s3799_s18 }
  0x10   :  { %s3834_s29 = sld [smem:[#allocation25_spill]] }
  0x16   :  { %s23_s5 = sshll.u32 %s3834_s29, 4  ;;  %s24_s5 = int_to_ptr.vmem [resolvable:$true] %s23_s5 }
  0x17   :  { %s3080_s30 = scalar_lea.vmem %s24_s5, 32  ;;  %p3085_p1 = scmp.lt.s32.totalorder %s24_s5, %s24_s5 }
  0x18   :  { %p3081_p0 = scmp.ne.s32.totalorder %s24_s5, %s3080_s30  ;;  %p3086_p2 = scmp.lt.s32.totalorder %s3080_s30, %s3080_s30 }
  0x1a   :  { %p3087_p3 = por %p3086_p2, %p3085_p1 }
  0x1c   :  { %p3088_p4 = pnand %p3087_p3, %p3081_p0 }
  0x1e   :  { %3091 = shalt.err (!%p3088_p4)  }
  0x1f   :  { %s3188_s0 = smov [#allocation4]  }
  0x20   :  { %26 = dma.vmem_to_smem %s24_s5, 32, %s3188_s0, [#allocation3] }
  0x21   :  { %3150 = dma.done.wait [#allocation3], 32 }
  0x22   :  { %3151 = vsyncadd [#allocation3], 4294967264 }
  0x23   :  { %28 = sfence }
  0x24   :  { %29 = vsyncpa [#allocation6], 0 }
  0x25   :  { %31 = vsyncpa [#allocation6 + $0x1], 0  ;;  %s3291_s19 = smov 0   ;;  %s3293_s1 = smov 0  }
  0x26   :  { %s3295_s20 = smov 0   ;;  %s3297_s21 = smov 0  }
  0x27   :  { %s3299_s22 = smov 0   ;;  %s3301_s2 = smov 0  }
  0x28   :  { %s3303_s23 = smov 0   ;;  %s3305_s5 = smov 0  }
  0x29 LB: > { %3835 = sst [smem:[#allocation9_spill]] %s3158_s19  ;;  %s2602_s24 = sadd.s32 4294967295, %s3186_s5   ;;  %s3186_s5 = sphi %s3305_s5, %s37_s5   ;;  %s3182_s23 = sphi %s3303_s23, %s3898_s23   ;;  %s3178_s2 = sphi %s3301_s2, %s3897_s2   ;;  %s3174_s22 = sphi %s3299_s22, %s3896_s22   ;;  %s3170_s21 = sphi %s3297_s21, %s3895_s21   ;;  %s3166_s20 = sphi %s3295_s20, %s3894_s20   ;;  %s3162_s1 = sphi %s3293_s1, %s3893_s1   ;;  %s3158_s19 = sphi %s3291_s19, %s3892_s19  }
  0x2a   : > { %3836 = sst [smem:[#allocation10_spill]] %s3162_s1  ;;  %s2603_s25 = sadd.s32 4294967294, %s3186_s5  }
  0x2b   : > { %3837 = sst [smem:[#allocation11_spill]] %s3166_s20  ;;  %s46_s26 = sadd.s32 1, %s3178_s2 }
  0x2c   : > { %3838 = sst [smem:[#allocation12_spill]] %s3170_s21  ;;  %p47_p5 = scmp.ge.s32.totalorder %s46_s26, 2 }
  0x2d   : > { %3839 = sst [smem:[#allocation13_spill]] %s3174_s22  ;;  %s49_s27 = sadd.s32 1, %s3182_s23 }
  0x2e   : > { %3840 = sst [smem:[#allocation14_spill]] %s3178_s2  ;;  %p488_p6 = scmp.ne.s32.totalorder %s3166_s20, %s3162_s1 }
  0x2f   : > { %3841 = sst [smem:[#allocation15_spill]] %s3182_s23  ;;  %p489_p7 = scmp.eq.s32.totalorder %s2602_s24, 3 }
  0x30   : > { %3842 = sst [smem:[#allocation16_spill]] %s3186_s5  ;;  %s3900_s26 = smov (%p47_p5, %s46_s26), 0 }
  0x31   : > { %3843 = sst [smem:[#allocation17_spill]] %s3900_s26  ;;  %s3902_s27 = smov (!%p47_p5, %s49_s27), %s3182_s23 }
  0x32   : > { %p3340_p8 = por %p489_p7, %p488_p6  ;;  %p494_p9 = scmp.ne.s32.totalorder %s3162_s1, %s3158_s19 }
  0x33   : > { %p51_p10 = scmp.ge.s32.totalorder %s3902_s27, 2  ;;  %p495_p11 = scmp.eq.s32.totalorder %s2603_s25, 3 }
  0x34   : > { %s3844_s28 = scalar_select %p3340_p8, 1, 0 }
  0x35   : > { %p2606_p12 = scmp.ge.s32.totalorder %s3186_s5, 1  ;;  %p615_p13 = scmp.lt.s32.totalorder %s3186_s5, 5 }
  0x36   : > { %3845 = sst [smem:[#allocation18_spill]] %s3844_s28  ;;  %s3904_s27 = smov (%p51_p10, %s3902_s27), 0 }
  0x37   : > { %3846 = sst [smem:[#allocation19_spill]] %s3904_s27  ;;  %p3350_p0 = por %p495_p11, %p494_p9 }
  0x38   : > { %p616_p1 = pnand %p2606_p12, %p615_p13  ;;  %s475_s30 = ssub.s32 %s3182_s23, %s3904_s27 }
  0x39   : > { %s3847_s29 = scalar_select %p3350_p0, 1, 0 }
  0x3a   : > { %s478_s0 = sadd.s32 1, %s3166_s20  ;;  %p476_p2 = scmp.eq.s32.totalorder %s475_s30, 0 }
  0x3b   : > { %3848 = sst [smem:[#allocation20_spill]] %s3847_s29  ;;  %619 = sbr.rel (%p616_p1) target bundleno = 2609 (0xa31), region = 88 }
  0x3c   : > { %s3358_s24 = scalar_select %p476_p2, %s3166_s20, %s478_s0  }
  0x3e   : > { %3849 = sst [smem:[#allocation21_spill]] %s3358_s24 }
  0x40   : > { %s3804_s25 = sand.u32 1, %s3162_s1   ;;  %p713_p3 = scmp.lt.s32.totalorder %s3174_s22, 1 }
  0x41   : > { %s3364_s26 = sshll.u32 %s3804_s25, 3  ;;  %p716_p4 = scmp.lt.s32.totalorder %s3170_s21, 1 }
  0x42   : > { %3850 = sst [smem:[#allocation22_spill]] %s3364_s26  ;;  %p2620_p5 = scmp.ne.s32.totalorder %s3170_s21, 0 }
  0x43   : > { %s3368_s2 = scalar_select %p713_p3, %s3174_s22, 1 }
  0x44   : > { %s3371_s27 = scalar_select %p716_p4, %s3170_s21, 1 }
  0x45   : > { %3851 = sst [smem:[#allocation23_spill]] %s3368_s2 }
  0x46   : > { %s2691_s24 = sshll.u32 %s3371_s27, 6  ;;  %s2694_s20 = sshll.u32 %s3371_s27, 4 }
  0x47   : > { %s3853_s6 = sld [smem:[#allocation31_spill]]  ;;  %s2696_s3 = sshll.u32 %s3371_s27, 5 }
  0x48   : > { %s3854_s7 = sld [smem:[#allocation32_spill]] }
  0x49   : > { %s3856_s8 = sld [smem:[#allocation33_spill]] }
  0x4a   : > { %s3857_s9 = sld [smem:[#allocation34_spill]] }
  0x4b   : > { %s3858_s12 = sld [smem:[#allocation35_spill]] }
  0x4c   : > { %s3859_s14 = sld [smem:[#allocation36_spill]] }
  0x4d   : > { %s3382_s5 = scalar_lea.vmem %s3853_s6, %s2691_s24  ;;  %s3862_s28 = sld [smem:[#allocation13_spill]] (!%p2620_p5) }
  0x4e   : > { %s3387_s0 = scalar_lea.vmem %s3854_s7, %s2691_s24  ;;  %768 = sbr.rel (%p2620_p5) target bundleno = 419 (0x1a3), region = 92 }
  0x4f   : > { %3855 = sst [smem:[#allocation24_spill]] %s3387_s0  ;;  %s3392_s4 = scalar_lea.vmem %s3856_s8, %s2691_s24 }
  0x50   : > { %s3397_s25 = scalar_lea.vmem %s3857_s9, %s2694_s20  ;;  %s3863_s18 = sld [smem:[#allocation27_spill]] (!%p2620_p5) }
  0x51   : > { %s3410_s0 = scalar_lea.vmem %s3858_s12, %s2694_s20  ;;  %s3865_s1 = sld [smem:[#allocation29_spill]] (!%p2620_p5) }
  0x52   : > { %s3424_s19 = scalar_lea.vmem %s3859_s14, %s2696_s3  ;;  %s3866_s17 = sld [smem:[#allocation30_spill]] (!%p2620_p5) }
  0x53   : > { %s2621_s8 = sshll.u32 %s3862_s28, 7  ;;  %vm773_vm0 = vcmask 253952   ;;  %vm815_vm1 = vcmask 261120  }
  0x54   : > { %s770_s23 = sld [smem:[#allocation4 + %s2621_s8]]  ;;  %s775_s9 = sadd.s32 1, %s2621_s8 }
  0x55   : > { %s776_s24 = sld [smem:[#allocation4 + %s775_s9]]  ;;  %s780_s22 = sadd.s32 2, %s2621_s8 }
  0x56   : > { %s781_s3 = sld [smem:[#allocation4 + %s780_s22]]  ;;  %s785_s2 = sadd.s32 3, %s2621_s8 }
  0x57   : > { %s786_s12 = sld [smem:[#allocation4 + %s785_s2]]  ;;  %s790_s14 = sadd.s32 4, %s2621_s8  ;;  %v2622_v21 = vld [vmem:[%s3865_s1] ss:$0 sm:$0xff] }
  0x58   : > { %s791_s6 = sld [smem:[#allocation4 + %s790_s14]]  ;;  %s795_s29 = sadd.s32 5, %s2621_s8  ;;  %v2623_v23 = vld [vmem:[%s3866_s17] ss:$0 sm:$0xff] }
  0x59   : > { %s796_s7 = sld [smem:[#allocation4 + %s795_s29]]  ;;  %s800_s20 = sadd.s32 6, %s2621_s8 }
  0x5a   : > { %s771_s26 = scalar_lea.vmem %s3863_s18, %s770_s23  ;;  %s801_s21 = sld [smem:[#allocation4 + %s800_s20]] }
  0x5b   : > { %v772_v0 = vld [vmem:[%s771_s26] sm:$0x1]  ;;  %s777_s9 = scalar_lea.vmem %s3863_s18, %s776_s24  ;;  %s805_s16 = sadd.s32 7, %s2621_s8 }
  0x5c   : > { %774 = vst.msk [vmem:[#allocation2] sm:$0x1] %vm773_vm0, %v772_v0  ;;  %v778_v1 = vld [vmem:[%s777_s9] sm:$0x1]  ;;  %s782_s2 = scalar_lea.vmem %s3863_s18, %s781_s3  ;;  %s806_s29 = sld [smem:[#allocation4 + %s805_s16]] }
  0x5d   : > { %779 = vst.msk [vmem:[#allocation2 + $0x1] sm:$0x1] %vm773_vm0, %v778_v1  ;;  %v783_v2 = vld [vmem:[%s782_s2] sm:$0x1]  ;;  %s787_s26 = scalar_lea.vmem %s3863_s18, %s786_s12  ;;  %s3864_s2 = sld [smem:[#allocation28_spill]] }
  0x5e   : > { %784 = vst.msk [vmem:[#allocation2 + $0x2] sm:$0x1] %vm773_vm0, %v783_v2  ;;  %v788_v3 = vld [vmem:[%s787_s26] sm:$0x1]  ;;  %s792_s8 = scalar_lea.vmem %s3863_s18, %s791_s6 }
  0x5f   : > { %789 = vst.msk [vmem:[#allocation2 + $0x3] sm:$0x1] %vm773_vm0, %v788_v3  ;;  %v793_v4 = vld [vmem:[%s792_s8] sm:$0x1]  ;;  %s797_s16 = scalar_lea.vmem %s3863_s18, %s796_s7 }
  0x60   : > { %794 = vst.msk [vmem:[#allocation2 + $0x4] sm:$0x1] %vm773_vm0, %v793_v4  ;;  %v798_v5 = vld [vmem:[%s797_s16] sm:$0x1]  ;;  %s802_s12 = scalar_lea.vmem %s3863_s18, %s801_s21 }
  0x61   : > { %799 = vst.msk [vmem:[#allocation2 + $0x5] sm:$0x1] %vm773_vm0, %v798_v5  ;;  %v803_v6 = vld [vmem:[%s802_s12] sm:$0x1] }
  0x62   : > { %804 = vst.msk [vmem:[#allocation2 + $0x6] sm:$0x1] %vm773_vm0, %v803_v6  ;;  %s807_s22 = scalar_lea.vmem %s3863_s18, %s806_s29 }
  0x63   : > { %v808_v7 = vld [vmem:[%s807_s22] sm:$0x1] }
  0x64   : > { %809 = vst.msk [vmem:[#allocation2 + $0x7] sm:$0x1] %vm773_vm0, %v808_v7  ;;  %v811_v8 = vld [vmem:[%s3864_s2] sm:$0xff] }
  0x6b   : > { %v810_v9 = vld [vmem:[#allocation2] sm:$0xff] }
  0x6c   : > { %v812_v10 = vadd.f32 %v811_v8, %v810_v9 }
  0x6e   : > { %v816_v11 = vsel %vm815_vm1, %v812_v10, 0.0 }
  0x6f   : > { %817 = vadd.xlane.f32.xlu0 %v816_v11 }
  0xf8   : > { %v818_v12 = vpop.xlane.xlu0 %817 }
  0xf9   : > { %v820_v13 = vmul.f32 0.03125, %v818_v12 }
  0xfb   : > { %v821_v14 = vsub.f32 %v812_v10, %v820_v13 }
  0xfd   : > { %v822_v15 = vmul.f32 %v821_v14, %v821_v14 }
  0xff   : > { %v823_v16 = vsel %vm815_vm1, %v822_v15, 0.0 }
 0x100   : > { %824 = vadd.xlane.f32.xlu0 %v823_v16 }
 0x189   : > { %v825_v17 = vpop.xlane.xlu0 %824 }
 0x18a   : > { %v826_v18 = vmul.f32 0.03125, %v825_v17 }
 0x18c   : > { %v827_v19 = vadd.f32 1e-06, %v826_v18 }
 0x18e   : > { %3028 = vrsqrt.f32 %v827_v19 }
 0x19b   : > { %v3029_v20 = vpop.eup %3028 }
 0x19c   : > { %v829_v22 = vmul.f32 %v3029_v20, %v821_v14 }
 0x19e   : > { %v836_v24 = vmul.f32 %v2622_v21, %v829_v22 }
 0x1a0   : > { %v843_v25 = vadd.f32 %v2623_v23, %v836_v24 }
 0x1a2   : > { %844 = vst.msk [vmem:[#allocation2] sm:$0xff] %vm815_vm1, %v843_v25 }
 0x1a3 PF: > { %v3030_v26 = vld [vmem:[%s3382_s5 + $0x8] sm:$0xff]   ;;  %v3189_v27 = vmov 0.0   ;;  %v3031_v28 = vld [vmem:[%s3382_s5 + $0x18] sm:$0xff]   ;;  %v3032_v29 = vld [vmem:[%s3382_s5] sm:$0xff]   ;;  %vm3190_vm2 = vmmov 0   ;;  %vm930_vm3 = vcmask 261120   ;;  %s3871_s16 = scalar_lea.vmem %s3791_s10, %s3371_s27  ;;  %s3872_s12 = scalar_lea.vmem %s3792_s11, %s3371_s27 }
 0x1a4   : > { %2765 = vmatprep.subr.bf16.mxu0 %v3189_v27  ;;  %2773 = vmatprep.subr.bf16.mxu1 %v3189_v27  ;;  %v3033_v30 = vld [vmem:[%s3382_s5 + $0x10] sm:$0xff]   ;;  %v3034_v33 = vld [vmem:[%s3382_s5 + $0x28] sm:$0xff]   ;;  %s3867_s24 = sld [smem:[#allocation24_spill]]  ;;  %v3035_v34 = vld [vmem:[%s3382_s5 + $0x38] sm:$0xff]   ;;  %vm1554_vm4 = vcmask 64512   ;;  %vm1809_vm5 = vcmask 1043456   ;;  %s3873_s22 = scalar_lea.vmem %s3794_s13, %s3371_s27 }
 0x1a5   : > { %2766 = vmatpush3.bf16.msra.mxu0 %v3030_v26  ;;  %2769 = vmatprep.mubr.msk.bf16.mxu0 %vm3190_vm2, %v3189_v27  ;;  %v3036_v35 = vld [vmem:[%s3382_s5 + $0x20] sm:$0xff]   ;;  %v3037_v36 = vld [vmem:[%s3382_s5 + $0x30] sm:$0xff]   ;;  %v3046_v45 = vld [vmem:[%s3392_s4 + $0x8] sm:$0xff]   ;;  %s3869_s20 = sld [smem:[#allocation26_spill]]  ;;  %vm2309_vm8 = vcmask 523264   ;;  %s3874_s2 = scalar_lea.vmem %s3796_s15, %s3371_s27 }
 0x1a6   : > { %2774 = vmatpush3.bf16.msra.mxu1 %v3031_v28  ;;  %2767 = vmatprep.subr.bf16.mxu0 %v3189_v27  ;;  %v3047_v46 = vld [vmem:[%s3392_s4] sm:$0xff]   ;;  %v3048_v47 = vld [vmem:[%s3392_s4 + $0x18] sm:$0xff]   ;;  %v3049_v48 = vld [vmem:[%s3392_s4 + $0x10] sm:$0xff]   ;;  %s3875_s29 = sld [smem:[#allocation37_spill]] }
 0x1a7   : > { %2775 = vmatprep.subr.bf16.mxu1 %v3189_v27  ;;  %2777 = vmatprep.mubr.msk.bf16.mxu1 %vm3190_vm2, %v3189_v27  ;;  %v3050_v49 = vld [vmem:[%s3392_s4 + $0x28] sm:$0xff]   ;;  %v3051_v50 = vld [vmem:[%s3392_s4 + $0x20] sm:$0xff]   ;;  %v3052_v51 = vld [vmem:[%s3392_s4 + $0x38] sm:$0xff]   ;;  %s3877_s17 = sld [smem:[#allocation38_spill]] }
 0x1a8   : > { %v3053_v52 = vld [vmem:[%s3392_s4 + $0x30] sm:$0xff]   ;;  %s3868_s4 = sld [smem:[#allocation23_spill]] }
 0x1a9   : > { %v3493_v31 = vld [vmem:[#allocation2] sm:$0xff]  ;;  %2768 = vmatpush3.bf16.msra.mxu0 %v3032_v29 }
 0x1aa   : > { %v3497_v32 = vpack.c.bf16 %v3493_v31, %v3493_v31  ;;  %2776 = vmatpush3.bf16.msra.mxu1 %v3033_v30  ;;  %2781 = vmatprep.subr.bf16.mxu0 %v3189_v27  ;;  %v3038_v37 = vld [vmem:[%s3867_s24 + $0x8] sm:$0xff]   ;;  %v3039_v38 = vld [vmem:[%s3867_s24 + $0x18] sm:$0xff]   ;;  %v3040_v39 = vld [vmem:[%s3867_s24] sm:$0xff]  }
 0x1ab   : > { %2789 = vmatprep.subr.bf16.mxu1 %v3189_v27  ;;  %v3041_v40 = vld [vmem:[%s3867_s24 + $0x10] sm:$0xff]   ;;  %v3042_v41 = vld [vmem:[%s3867_s24 + $0x28] sm:$0xff]   ;;  %v3043_v42 = vld [vmem:[%s3867_s24 + $0x38] sm:$0xff]  }
 0x1ac   : > { %2770 = vmatmul.mubr.msk.bf16.vlgmr.msra.gmra.mxu0 %vm930_vm3, %v3497_v32  ;;  %v3044_v43 = vld [vmem:[%s3867_s24 + $0x20] sm:$0xff]   ;;  %v3045_v44 = vld [vmem:[%s3867_s24 + $0x30] sm:$0xff]   ;;  %s3876_s1 = scalar_lea.vmem %s3875_s29, %s3371_s27 }
 0x1ad   : > { %2778 = vmatmul.mubr.msk.bf16.vlgmr.msra.gmra.mxu1 %vm930_vm3, %v3497_v32  ;;  %2782 = vmatpush3.bf16.msra.mxu0 %v3034_v33  ;;  %s3878_s24 = scalar_lea.vmem %s3877_s17, %s3371_s27 }
 0x1ae   : > { %2790 = vmatpush3.bf16.msra.mxu1 %v3035_v34  ;;  %2783 = vmatprep.subr.bf16.mxu0 %v3189_v27  ;;  %s3870_s3 = scalar_lea.vmem %s3869_s20, %s3868_s4  ;;  %s3879_s4 = sld [smem:[#allocation12_spill]] }
 0x1af   : > { %2791 = vmatprep.subr.bf16.mxu1 %v3189_v27  ;;  %2785 = vmatprep.mubr.msk.bf16.mxu0 %vm3190_vm2, %v3189_v27 }
 0x1b0   : > { %2793 = vmatprep.mubr.msk.bf16.mxu1 %vm3190_vm2, %v3189_v27 }
 0x1b1   : > { %2784 = vmatpush3.bf16.msra.mxu0 %v3036_v35 }
 0x1b2   : > { %2792 = vmatpush3.bf16.msra.mxu1 %v3037_v36  ;;  %2797 = vmatprep.subr.bf16.mxu0 %v3189_v27 }
 0x1b3   : > { %2805 = vmatprep.subr.bf16.mxu1 %v3189_v27 }
 0x1b4   : > { %2786 = vmatmul.mubr.msk.bf16.vlgmr.msra.gmra.mxu0 %vm930_vm3, %v3497_v32  ;;  %p2686_p6 = scmp.ne.s32.totalorder %s3879_s4, 1 }
 0x1b5   : > { %2794 = vmatmul.mubr.msk.bf16.vlgmr.msra.gmra.mxu1 %vm930_vm3, %v3497_v32  ;;  %2798 = vmatpush3.bf16.msra.mxu0 %v3038_v37  ;;  %s3880_s5 = sld [smem:[#allocation22_spill]] (!%p2686_p6) }
 0x1b6   : > { %2806 = vmatpush3.bf16.msra.mxu1 %v3039_v38  ;;  %2799 = vmatprep.subr.bf16.mxu0 %v3189_v27 }
 0x1b7   : > { %2807 = vmatprep.subr.bf16.mxu1 %v3189_v27  ;;  %2801 = vmatprep.mubr.msk.bf16.mxu0 %vm3190_vm2, %v3189_v27 }
 0x1b8   : > { %2809 = vmatprep.mubr.msk.bf16.mxu1 %vm3190_vm2, %v3189_v27 }
 0x1b9   : > { %2800 = vmatpush3.bf16.msra.mxu0 %v3040_v39 }
 0x1ba   : > { %2808 = vmatpush3.bf16.msra.mxu1 %v3041_v40  ;;  %2813 = vmatprep.subr.bf16.mxu0 %v3189_v27 }
 0x1bb   : > { %2821 = vmatprep.subr.bf16.mxu1 %v3189_v27  ;;  %s3881_s8 = scalar_lea.vmem (!%p2686_p6), [#allocation5], %s3880_s5 }
 0x1bc   : > { %2802 = vmatmul.mubr.msk.bf16.vlgmr.msra.gmra.mxu0 %vm930_vm3, %v3497_v32 }
 0x1bd   : > { %2810 = vmatmul.mubr.msk.bf16.vlgmr.msra.gmra.mxu1 %vm930_vm3, %v3497_v32  ;;  %2814 = vmatpush3.bf16.msra.mxu0 %v3042_v41 }
 0x1be   : > { %2822 = vmatpush3.bf16.msra.mxu1 %v3043_v42  ;;  %2815 = vmatprep.subr.bf16.mxu0 %v3189_v27 }
 0x1bf   : > { %2823 = vmatprep.subr.bf16.mxu1 %v3189_v27  ;;  %2817 = vmatprep.mubr.msk.bf16.mxu0 %vm3190_vm2, %v3189_v27 }
 0x1c0   : > { %2825 = vmatprep.mubr.msk.bf16.mxu1 %vm3190_vm2, %v3189_v27 }
 0x1c1   : > { %2816 = vmatpush3.bf16.msra.mxu0 %v3044_v43 }
 0x1c2   : > { %2824 = vmatpush3.bf16.msra.mxu1 %v3045_v44  ;;  %2829 = vmatprep.subr.bf16.mxu0 %v3189_v27 }
 0x1c3   : > { %2837 = vmatprep.subr.bf16.mxu1 %v3189_v27 }
 0x1c4   : > { %2818 = vmatmul.mubr.msk.bf16.vlgmr.msra.gmra.mxu0 %vm930_vm3, %v3497_v32 }
 0x1c5   : > { %2826 = vmatmul.mubr.msk.bf16.vlgmr.msra.gmra.mxu1 %vm930_vm3, %v3497_v32  ;;  %2830 = vmatpush3.bf16.msra.mxu0 %v3046_v45 }
 0x1c6   : > { %2831 = vmatprep.subr.bf16.mxu0 %v3189_v27  ;;  %2833 = vmatprep.mubr.msk.bf16.mxu0 %vm3190_vm2, %v3189_v27 }
 0x1c7   : > { %2841 = vmatprep.mubr.msk.bf16.mxu1 %vm3190_vm2, %v3189_v27  ;;  %2838 = vmatpush3.bf16.msra.mxu1 %v3048_v47 }
 0x1c8   : > { %2839 = vmatprep.subr.bf16.mxu1 %v3189_v27 }
 0x1c9   : > { %2832 = vmatpush3.bf16.msra.mxu0 %v3047_v46 }
 0x1ca   : > { %2845 = vmatprep.subr.bf16.mxu0 %v3189_v27 }
 0x1cb   : > { %2840 = vmatpush3.bf16.msra.mxu1 %v3049_v48 }
 0x1cc   : > { %2834 = vmatmul.mubr.msk.bf16.vlgmr.msra.gmra.mxu0 %vm930_vm3, %v3497_v32  ;;  %2853 = vmatprep.subr.bf16.mxu1 %v3189_v27 }
 0x1cd   : > { %2846 = vmatpush3.bf16.msra.mxu0 %v3050_v49  ;;  %2849 = vmatprep.mubr.msk.bf16.mxu0 %vm3190_vm2, %v3189_v27 }
 0x1ce   : > { %2847 = vmatprep.subr.bf16.mxu0 %v3189_v27  ;;  %2842 = vmatmul.mubr.msk.bf16.vlgmr.msra.gmra.mxu1 %vm930_vm3, %v3497_v32 }
 0x1cf   : > { %2854 = vmatpush3.bf16.msra.mxu1 %v3052_v51  ;;  %2857 = vmatprep.mubr.msk.bf16.mxu1 %vm3190_vm2, %v3189_v27 }
 0x1d0   : > { %2855 = vmatprep.subr.bf16.mxu1 %v3189_v27 }
 0x1d1   : > { %2848 = vmatpush3.bf16.msra.mxu0 %v3051_v50 }
 0x1d2   : > { %2861 = vmatprep.subr.bf16.mxu0 %v3189_v27 }
 0x1d3   : > { %2856 = vmatpush3.bf16.msra.mxu1 %v3053_v52 }
 0x1d4   : > { %2850 = vmatmul.mubr.msk.bf16.vlgmr.msra.gmra.mxu0 %vm930_vm3, %v3497_v32  ;;  %2867 = vmatprep.subr.bf16.mxu1 %v3189_v27 }
 0x1d5   : > { %2863 = vmatprep.mubr.msk.bf16.mxu0 %vm3190_vm2, %v3189_v27 }
 0x1d6   : > { %2858 = vmatmul.mubr.msk.bf16.vlgmr.msra.gmra.mxu1 %vm930_vm3, %v3497_v32 }
 0x1d7   : > { %2869 = vmatprep.mubr.msk.bf16.mxu1 %vm3190_vm2, %v3189_v27 }
 0x26c   : > { %v968_v53 = vpop.f32.mrf.mxu0 }
 0x26d   : > { %v1020_v54 = vpop.f32.mrf.mxu1  ;;  %v1546_v18 = vpack.c.bf16 %v968_v53, %v968_v53 }
 0x26e   : > { %v2771_v55 = vpop.f32.mrf.mxu0  ;;  %v1547_v21 = vpack.c.bf16 %v1020_v54, %v1020_v54 }
 0x26f   : > { %v2779_v56 = vpop.f32.mrf.mxu1  ;;  %v1745_v55 = vlaneseq }
 0x270   : > { %v971_v57 = vpop.f32.mrf.mxu0  ;;  %v846_v56 = vld [vmem:[%s3870_s3] sm:$0x1] }
 0x271   : > { %v1023_v58 = vpop.f32.mrf.mxu1  ;;  %v1746_v57 = vshrl.u32 %v1745_v55, 7  ;;  %vm1743_vm6 = vcmp.eq.f32.partialorder %v846_v56, 0.0 }
 0x272   : > { %v2772_v59 = vpop.f32.mrf.mxu0 }
 0x273   : > { %v2780_v60 = vpop.f32.mrf.mxu1  ;;  %v1747_v58 = vsub.s32 0, %v1746_v57  ;;  %v3191_v59 = vmov 0  }
 0x274   : > { %v1072_v61 = vpop.f32.mrf.mxu0  ;;  %v1744_v60 = vsel %vm1743_vm6, 1, %v3191_v59 }
 0x275   : > { %v1124_v62 = vpop.f32.mrf.mxu1  ;;  %v1548_v33 = vpack.c.bf16 %v1072_v61, %v1072_v61  ;;  %v1748_v61 = vrot.slane %v1744_v60, %v1747_v58 }
 0x276   : > { %v2787_v63 = vpop.f32.mrf.mxu0  ;;  %v1549_v34 = vpack.c.bf16 %v1124_v62, %v1124_v62 }
 0x277   : > { %v2795_v0 = vpop.f32.mrf.mxu1  ;;  %vm1749_vm7 = vcmp.eq.s32.totalorder %v1748_v61, 1 }
 0x278   : > { %v1075_v1 = vpop.f32.mrf.mxu0 }
 0x279   : > { %v1127_v2 = vpop.f32.mrf.mxu1 }
 0x27a   : > { %v2788_v3 = vpop.f32.mrf.mxu0 }
 0x27b   : > { %v2796_v4 = vpop.f32.mrf.mxu1 }
 0x27c   : > { %v1176_v5 = vpop.f32.mrf.mxu0 }
 0x27d   : > { %v1550_v6 = vpack.c.bf16 %v1176_v5, %v1176_v5  ;;  %v1228_v7 = vpop.f32.mrf.mxu1 }
 0x27e   : > { %v1551_v8 = vpack.c.bf16 %v1228_v7, %v1228_v7  ;;  %v2803_v9 = vpop.f32.mrf.mxu0 }
 0x27f   : > { %v1559_v10 = vsel %vm1554_vm4, %v1550_v6, 0  ;;  %v2811_v11 = vpop.f32.mrf.mxu1 }
 0x280   : > { %v1605_v12 = vsel %vm1554_vm4, %v1551_v8, 0  ;;  %v1179_v13 = vpop.f32.mrf.mxu0  ;;  %2862 = vmatpush3.bf16.xpose.msra.mxu0 %v1559_v10 }
 0x281   : > { %v1231_v14 = vpop.f32.mrf.mxu1  ;;  %2868 = vmatpush3.bf16.xpose.msra.mxu1 %v1605_v12  ;;  %2873 = vmatprep.subr.bf16.mxu0 %v3189_v27 }
 0x282   : > { %v2804_v15 = vpop.f32.mrf.mxu0  ;;  %2879 = vmatprep.subr.bf16.mxu1 %v3189_v27 }
 0x283   : > { %v2812_v16 = vpop.f32.mrf.mxu1 }
 0x284   : > { %v1280_v17 = vpop.f32.mrf.mxu0 }
 0x285   : > { %v1552_v19 = vpack.c.bf16 %v1280_v17, %v1280_v17  ;;  %v1332_v20 = vpop.f32.mrf.mxu1 }
 0x286   : > { %v1553_v22 = vpack.c.bf16 %v1332_v20, %v1332_v20  ;;  %v2819_v23 = vpop.f32.mrf.mxu0 }
 0x287   : > { %v1651_v24 = vsel %vm1554_vm4, %v1552_v19, 0  ;;  %v2827_v25 = vpop.f32.mrf.mxu1  ;;  %2864 = vmatmul.mubr.msk.bf16.vlgmr.msra.gmra.mxu0 %vm1554_vm4, %v1546_v18 }
 0x288   : > { %v1697_v26 = vsel %vm1554_vm4, %v1553_v22, 0  ;;  %2870 = vmatmul.mubr.msk.bf16.vlgmr.msra.gmra.mxu1 %vm1554_vm4, %v1547_v21  ;;  %v1283_v28 = vpop.f32.mrf.mxu0  ;;  %2874 = vmatpush3.bf16.xpose.msra.mxu0 %v1651_v24 }
 0x289   : > { %v1335_v29 = vpop.f32.mrf.mxu1  ;;  %2880 = vmatpush3.bf16.xpose.msra.mxu1 %v1697_v26  ;;  %2875 = vmatprep.mubr.msk.bf16.mxu0 %vm3190_vm2, %v3189_v27 }
 0x28a   : > { %v2820_v30 = vpop.f32.mrf.mxu0  ;;  %2881 = vmatprep.mubr.msk.bf16.mxu1 %vm3190_vm2, %v3189_v27  ;;  %2885 = vmatprep.subr.bf16.mxu0 %v3189_v27 }
 0x28b   : > { %v2828_v32 = vpop.f32.mrf.mxu1  ;;  %2891 = vmatprep.subr.bf16.mxu1 %v3189_v27 }
 0x28c   : > { %v1384_v35 = vpop.f32.mrf.mxu0 }
 0x28d   : > { %v1802_v36 = vpack.c.bf16 %v1384_v35, %v1384_v35 }
 0x28e   : > { %v2835_v37 = vpop.f32.mrf.mxu0  ;;  %v1436_v40 = vpop.f32.mrf.mxu1 }
 0x28f   : > { %2876 = vmatmul.mubr.msk.bf16.vlgmr.msra.gmra.mxu0 %vm1554_vm4, %v1548_v33  ;;  %v1811_v38 = vsel %vm1809_vm5, %v1802_v36, 0  ;;  %v1803_v41 = vpack.c.bf16 %v1436_v40, %v1436_v40 }
 0x290   : > { %2882 = vmatmul.mubr.msk.bf16.vlgmr.msra.gmra.mxu1 %vm1554_vm4, %v1549_v34  ;;  %2887 = vmatprep.mubr.msk.bf16.mxu0 %vm3190_vm2, %v3189_v27  ;;  %v1387_v39 = vpop.f32.mrf.mxu0  ;;  %v2843_v43 = vpop.f32.mrf.mxu1 }
 0x291   : > { %2893 = vmatprep.mubr.msk.bf16.mxu1 %vm3190_vm2, %v3189_v27  ;;  %2886 = vmatpush3.bf16.msra.mxu0 %v1811_v38  ;;  %v1857_v44 = vsel %vm1809_vm5, %v1803_v41, 0 }
 0x292   : > { %2897 = vmatprep.subr.bf16.mxu0 %v3189_v27  ;;  %v2836_v42 = vpop.f32.mrf.mxu0  ;;  %v1439_v45 = vpop.f32.mrf.mxu1  ;;  %2892 = vmatpush3.bf16.msra.mxu1 %v1857_v44 }
 0x293   : > { %2903 = vmatprep.subr.bf16.mxu1 %v3189_v27 }
 0x294   : > { %v3612_v46 = vpop.f32.mrf.mxu0  ;;  %v2844_v47 = vpop.f32.mrf.mxu1 }
 0x295   : > { %v1804_v55 = vpack.c.bf16 %v3612_v46, %v3612_v46  ;;  %v895_v46 = vld [vmem:[%s3397_s25] sm:$0xf] }
 0x296   : > { %v2851_v48 = vpop.f32.mrf.mxu0  ;;  %v3615_v50 = vpop.f32.mrf.mxu1 }
 0x297   : > { %v1903_v59 = vsel %vm1809_vm5, %v1804_v55, 0  ;;  %v1805_v60 = vpack.c.bf16 %v3615_v50, %v3615_v50 }
 0x298   : > { %v1491_v49 = vpop.f32.mrf.mxu0  ;;  %v2859_v52 = vpop.f32.mrf.mxu1 }
 0x29a   : > { %v2852_v51 = vpop.f32.mrf.mxu0  ;;  %v1543_v53 = vpop.f32.mrf.mxu1 }
 0x29c   : > { %v2860_v54 = vpop.f32.mrf.mxu1 }
 0x347   : > { %v1595_v62 = vpop.f32.mrf.mxu0 }
 0x348   : > { %v1739_v63 = vmul.f32 0.35355338, %v1595_v62  ;;  %v1641_v0 = vpop.f32.mrf.mxu1 }
 0x349   : > { %v1740_v1 = vmul.f32 0.35355338, %v1641_v0  ;;  %v2865_v2 = vpop.f32.mrf.mxu0  ;;  %v1949_v0 = vsel %vm1809_vm5, %v1805_v60, 0 }
 0x34a   : > { %v2871_v3 = vpop.f32.mrf.mxu1  ;;  %v1750_v4 = vsel %vm1749_vm7, -1e+09, %v1739_v63  ;;  %v1999_v2 = vsel %vm1809_vm5, %v895_v46, 0 }
 0x34b   : > { %v1598_v5 = vpop.f32.mrf.mxu0  ;;  %v1754_v6 = vsel %vm1554_vm4, %v1750_v4, -inf  ;;  %v1751_v8 = vsel %vm1749_vm7, -1e+09, %v1740_v1 }
 0x34c   : > { %v1644_v7 = vpop.f32.mrf.mxu1  ;;  %1755 = vmax.xlane.f32.xlu0 %v1754_v6  ;;  %v1757_v12 = vsel %vm1554_vm4, %v1751_v8, -inf  ;;  %v896_v6 = vld [vmem:[%s3397_s25 + $0x4] sm:$0xf] }
 0x34d   : > { %v2866_v9 = vpop.f32.mrf.mxu0  ;;  %v2045_v7 = vsel %vm1809_vm5, %v896_v6, 0 }
 0x34e   : > { %v2872_v10 = vpop.f32.mrf.mxu1 }
 0x34f   : > { %v1687_v11 = vpop.f32.mrf.mxu0 }
 0x350   : > { %v1741_v13 = vmul.f32 0.35355338, %v1687_v11  ;;  %v1733_v14 = vpop.f32.mrf.mxu1  ;;  %1758 = vmax.xlane.f32.xlu0 %v1757_v12 }
 0x351   : > { %v1742_v15 = vmul.f32 0.35355338, %v1733_v14  ;;  %v2877_v16 = vpop.f32.mrf.mxu0 }
 0x352   : > { %v2883_v17 = vpop.f32.mrf.mxu1  ;;  %v1752_v18 = vsel %vm1749_vm7, -1e+09, %v1741_v13  ;;  %v898_v13 = vld [vmem:[%s3397_s25 + $0xc] sm:$0xf] }
 0x353   : > { %v1690_v19 = vpop.f32.mrf.mxu0  ;;  %v1760_v20 = vsel %vm1554_vm4, %v1752_v18, -inf  ;;  %v1753_v22 = vsel %vm1749_vm7, -1e+09, %v1742_v15  ;;  %v2137_v17 = vsel %vm1809_vm5, %v898_v13, 0  ;;  %v3058_v13 = vld [vmem:[%s3424_s19 + $0x8] sm:$0xff]  }
 0x354   : > { %v1736_v21 = vpop.f32.mrf.mxu1  ;;  %1761 = vmax.xlane.f32.xlu1 %v1760_v20  ;;  %v1763_v25 = vsel %vm1554_vm4, %v1753_v22, -inf }
 0x355   : > { %v2878_v23 = vpop.f32.mrf.mxu0 }
 0x356   : > { %v2884_v24 = vpop.f32.mrf.mxu1 }
 0x358   : > { %1764 = vmax.xlane.f32.xlu1 %v1763_v25 }
 0x3d5   : > { %v1756_v26 = vpop.xlane.xlu0 %1755 }
 0x3d6   : > { %v1766_v28 = vsub.f32 %v1750_v4, %v1756_v26 }
 0x3d8   : > { %v1770_v29 = vmul.f32 1.442695, %v1766_v28 }
 0x3d9   : > { %v1759_v30 = vpop.xlane.xlu0 %1758 }
 0x3da   : > { %3060 = vpow2.f32 %v1770_v29  ;;  %v1767_v32 = vsub.f32 %v1751_v8, %v1759_v30  ;;  %v897_v8 = vld [vmem:[%s3397_s25 + $0x8] sm:$0xf] }
 0x3db   : > { %v2091_v11 = vsel %vm1809_vm5, %v897_v8, 0 }
 0x3dc   : > { %v1772_v33 = vmul.f32 1.442695, %v1767_v32 }
 0x3dd   : > { %v1762_v34 = vpop.xlane.xlu1 %1761 }
 0x3de   : > { %3062 = vpow2.f32 %v1772_v33  ;;  %v1768_v35 = vsub.f32 %v1752_v18, %v1762_v34 }
 0x3e0   : > { %v1774_v36 = vmul.f32 1.442695, %v1768_v35 }
 0x3e1   : > { %v1765_v37 = vpop.xlane.xlu1 %1764 }
 0x3e2   : > { %3064 = vpow2.f32 %v1774_v36  ;;  %v1769_v38 = vsub.f32 %v1753_v22, %v1765_v37 }
 0x3e4   : > { %v1776_v39 = vmul.f32 1.442695, %v1769_v38 }
 0x3e6   : > { %3066 = vpow2.f32 %v1776_v39 }
 0x3e7   : > { %v3061_v40 = vpop.eup %3060 }
 0x3e8   : > { %v1778_v41 = vsel %vm1554_vm4, %v3061_v40, 0.0 }
 0x3e9   : > { %1779 = vadd.xlane.f32.xlu0 %v1778_v41 }
 0x3eb   : > { %v3063_v42 = vpop.eup %3062 }
 0x3ec   : > { %v1781_v43 = vsel %vm1554_vm4, %v3063_v42, 0.0 }
 0x3ed   : > { %1782 = vadd.xlane.f32.xlu1 %v1781_v43 }
 0x3ef   : > { %v3065_v44 = vpop.eup %3064 }
 0x3f0   : > { %v1784_v45 = vsel %vm1554_vm4, %v3065_v44, 0.0 }
 0x3f1   : > { %1785 = vadd.xlane.f32.xlu0 %v1784_v45 }
 0x3f3   : > { %v3067_v47 = vpop.eup %3066 }
 0x3f4   : > { %v1787_v48 = vsel %vm1554_vm4, %v3067_v47, 0.0 }
 0x3f5   : > { %1788 = vadd.xlane.f32.xlu1 %v1787_v48 }
 0x472   : > { %v1780_v49 = vpop.xlane.xlu0 %1779 }
 0x473   : > { %3068 = vrcp.f32 %v1780_v49 }
 0x476   : > { %v1783_v51 = vpop.xlane.xlu1 %1782 }
 0x477   : > { %3070 = vrcp.f32 %v1783_v51 }
 0x47a   : > { %v1786_v52 = vpop.xlane.xlu0 %1785 }
 0x47b   : > { %3072 = vrcp.f32 %v1786_v52 }
 0x47e   : > { %v1789_v53 = vpop.xlane.xlu1 %1788 }
 0x47f   : > { %3074 = vrcp.f32 %v1789_v53 }
 0x480   : > { %v3069_v54 = vpop.eup %3068 }
 0x481   : > { %v1791_v56 = vmul.f32 %v3069_v54, %v3061_v40 }
 0x483   : > { %v1798_v57 = vpack.c.bf16 %v1791_v56, %v1791_v56 }
 0x484   : > { %v3071_v58 = vpop.eup %3070 }
 0x485   : > { %2888 = vmatmul.mubr.msk.bf16.vlgmr.msra.gmra.mxu0 %vm1554_vm4, %v1798_v57  ;;  %v1793_v61 = vmul.f32 %v3071_v58, %v3063_v42 }
 0x486   : > { %2898 = vmatpush3.bf16.msra.mxu0 %v1903_v59  ;;  %2899 = vmatprep.mubr.msk.bf16.mxu0 %vm3190_vm2, %v3189_v27 }
 0x487   : > { %v1799_v62 = vpack.c.bf16 %v1793_v61, %v1793_v61  ;;  %2909 = vmatprep.subr.bf16.mxu0 %v3189_v27 }
 0x488   : > { %v3073_v63 = vpop.eup %3072 }
 0x489   : > { %2894 = vmatmul.mubr.msk.bf16.vlgmr.msra.gmra.mxu1 %vm1554_vm4, %v1799_v62  ;;  %v1795_v1 = vmul.f32 %v3073_v63, %v3065_v44 }
 0x48a   : > { %2904 = vmatpush3.bf16.msra.mxu1 %v1949_v0  ;;  %2905 = vmatprep.mubr.msk.bf16.mxu1 %vm3190_vm2, %v3189_v27 }
 0x48b   : > { %v1800_v50 = vpack.c.bf16 %v1795_v1, %v1795_v1  ;;  %2915 = vmatprep.subr.bf16.mxu1 %v3189_v27  ;;  %v3054_v1 = vld [vmem:[%s3410_s0 + $0x8] sm:$0xff]  }
 0x48c   : > { %v3075_v3 = vpop.eup %3074 }
 0x48d   : > { %2900 = vmatmul.mubr.msk.bf16.vlgmr.msra.gmra.mxu0 %vm1554_vm4, %v1800_v50  ;;  %v1797_v4 = vmul.f32 %v3075_v3, %v3067_v47  ;;  %v3055_v50 = vld [vmem:[%s3410_s0] sm:$0xff]  }
 0x48e   : > { %2910 = vmatpush3.bf16.msra.mxu0 %v1999_v2  ;;  %2911 = vmatprep.mubr.msk.bf16.mxu0 %vm3190_vm2, %v3189_v27  ;;  %v3057_v2 = vld [vmem:[%s3424_s19 + $0x10] sm:$0xff]  }
 0x48f   : > { %v1801_v5 = vpack.c.bf16 %v1797_v4, %v1797_v4  ;;  %2921 = vmatprep.subr.bf16.mxu0 %v3189_v27 }
 0x491   : > { %2906 = vmatmul.mubr.msk.bf16.vlgmr.msra.gmra.mxu1 %vm1554_vm4, %v1801_v5 }
 0x492   : > { %2917 = vmatprep.mubr.msk.bf16.mxu1 %vm3190_vm2, %v3189_v27  ;;  %2916 = vmatpush3.bf16.msra.mxu1 %v2045_v7  ;;  %v2672_v7 = vld [vmem:[%s3871_s16] ss:$0 sm:$0xff] }
 0x493   : > { %2927 = vmatprep.subr.bf16.mxu1 %v3189_v27 }
 0x545   : > { %v1847_v9 = vpop.f32.mrf.mxu0 }
 0x546   : > { %v1991_v10 = vpack.c.bf16 %v1847_v9, %v1847_v9  ;;  %v2673_v9 = vld [vmem:[%s3872_s12] ss:$0 sm:$0xff] }
 0x547   : > { %v2889_v12 = vpop.f32.mrf.mxu0 }
 0x548   : > { %2912 = vmatmul.mubr.msk.bf16.vlgmr.msra.gmra.mxu0 %vm1554_vm4, %v1991_v10 }
 0x549   : > { %v1850_v14 = vpop.f32.mrf.mxu0  ;;  %v1893_v15 = vpop.f32.mrf.mxu1  ;;  %2922 = vmatpush3.bf16.msra.mxu0 %v2091_v11  ;;  %2923 = vmatprep.mubr.msk.bf16.mxu0 %vm3190_vm2, %v3189_v27 }
 0x54a   : > { %v1992_v16 = vpack.c.bf16 %v1893_v15, %v1893_v15  ;;  %2933 = vmatprep.subr.bf16.mxu0 %v3189_v27  ;;  %v3059_v14 = vld [vmem:[%s3424_s19] sm:$0xff]  }
 0x54b   : > { %v2890_v18 = vpop.f32.mrf.mxu0  ;;  %v2895_v19 = vpop.f32.mrf.mxu1  ;;  %v2674_v15 = vld [vmem:[%s3873_s22] ss:$0 sm:$0xff] }
 0x54c   : > { %2918 = vmatmul.mubr.msk.bf16.vlgmr.msra.gmra.mxu1 %vm1554_vm4, %v1992_v16 }
 0x54d   : > { %v1896_v20 = vpop.f32.mrf.mxu1  ;;  %v1939_v21 = vpop.f32.mrf.mxu0  ;;  %2928 = vmatpush3.bf16.msra.mxu1 %v2137_v17  ;;  %2929 = vmatprep.mubr.msk.bf16.mxu1 %vm3190_vm2, %v3189_v27 }
 0x54e   : > { %v1993_v22 = vpack.c.bf16 %v1939_v21, %v1939_v21  ;;  %2941 = vmatprep.subr.bf16.mxu1 %v3189_v27 }
 0x54f   : > { %v2896_v23 = vpop.f32.mrf.mxu1  ;;  %v2901_v24 = vpop.f32.mrf.mxu0 }
 0x550   : > { %2924 = vmatmul.mubr.msk.bf16.vlgmr.msra.gmra.mxu0 %vm1554_vm4, %v1993_v22 }
 0x551   : > { %v1942_v25 = vpop.f32.mrf.mxu0  ;;  %v1985_v26 = vpop.f32.mrf.mxu1  ;;  %2937 = vmatprep.mubr.msk.bf16.mxu0 %vm3190_vm2, %v3189_v27  ;;  %2934 = vmatpush3.bf16.msra.mxu0 %v3054_v1 }
 0x552   : > { %v1994_v28 = vpack.c.bf16 %v1985_v26, %v1985_v26  ;;  %2935 = vmatprep.subr.bf16.mxu0 %v3189_v27 }
 0x553   : > { %v2902_v29 = vpop.f32.mrf.mxu0  ;;  %v2907_v30 = vpop.f32.mrf.mxu1 }
 0x554   : > { %2930 = vmatmul.mubr.msk.bf16.vlgmr.msra.gmra.mxu1 %vm1554_vm4, %v1994_v28 }
 0x555   : > { %v1988_v32 = vpop.f32.mrf.mxu1  ;;  %2949 = vmatprep.mubr.msk.bf16.mxu1 %vm3190_vm2, %v3189_v27  ;;  %2936 = vmatpush3.bf16.msra.mxu0 %v3055_v50 }
 0x557   : > { %v2908_v33 = vpop.f32.mrf.mxu1 }
 0x608   : > { %v2035_v34 = vpop.f32.mrf.mxu0 }
 0x609   : > { %v2179_v43 = vsel %vm930_vm3, %v2035_v34, 0.0 }
 0x60a   : > { %v2913_v35 = vpop.f32.mrf.mxu0 }
 0x60c   : > { %v2038_v36 = vpop.f32.mrf.mxu0  ;;  %v2081_v37 = vpop.f32.mrf.mxu1 }
 0x60d   : > { %v2180_v40 = vsel %vm930_vm3, %v2081_v37, 0.0 }
 0x60e   : > { %v2914_v38 = vpop.f32.mrf.mxu0  ;;  %v2919_v39 = vpop.f32.mrf.mxu1  ;;  %v2181_v45 = vadd.f32 %v2180_v40, %v2179_v43  ;;  %v2685_v43 = vld [vmem:[%s3878_s24] ss:$0 sm:$0xff] }
 0x610   : > { %v2084_v41 = vpop.f32.mrf.mxu1  ;;  %v2127_v42 = vpop.f32.mrf.mxu0 }
 0x611   : > { %v2182_v44 = vsel %vm930_vm3, %v2127_v42, 0.0  ;;  %v2684_v41 = vld [vmem:[%s3876_s1] ss:$0 sm:$0xff] }
 0x612   : > { %v2920_v47 = vpop.f32.mrf.mxu1  ;;  %v2925_v48 = vpop.f32.mrf.mxu0  ;;  %v2183_v49 = vadd.f32 %v2182_v44, %v2181_v45 }
 0x614   : > { %v2130_v51 = vpop.f32.mrf.mxu0  ;;  %v2173_v52 = vpop.f32.mrf.mxu1 }
 0x615   : > { %v2184_v53 = vsel %vm930_vm3, %v2173_v52, 0.0 }
 0x616   : > { %v2185_v54 = vadd.f32 %v2184_v53, %v2183_v49  ;;  %v2926_v55 = vpop.f32.mrf.mxu0  ;;  %v2931_v56 = vpop.f32.mrf.mxu1 }
 0x618   : > { %v2176_v57 = vpop.f32.mrf.mxu1  ;;  %v2186_v58 = vadd.f32 %v2185_v54, %v3493_v31  ;;  %v3056_v31 = vld [vmem:[%s3424_s19 + $0x18] sm:$0xff]  }
 0x619   : > { %2942 = vmatpush3.bf16.msra.mxu1 %v3056_v31 }
 0x61a   : > { %v2932_v59 = vpop.f32.mrf.mxu1  ;;  %v2187_v60 = vsel %vm930_vm3, %v2186_v58, 0.0  ;;  %2943 = vmatprep.subr.bf16.mxu1 %v3189_v27 }
 0x61b   : > { %2188 = vadd.xlane.f32.xlu0 %v2187_v60 }
 0x61d   : > { %2944 = vmatpush3.bf16.msra.mxu1 %v3057_v2 }
 0x61e   : > { %2945 = vmatprep.subr.bf16.mxu1 %v3189_v27 }
 0x621   : > { %2946 = vmatpush3.bf16.msra.mxu1 %v3058_v13 }
 0x622   : > { %2947 = vmatprep.subr.bf16.mxu1 %v3189_v27  ;;  %v2678_v27 = vld [vmem:[%s3874_s2] ss:$0 sm:$0xff] }
 0x625   : > { %2948 = vmatpush3.bf16.msra.mxu1 %v3059_v14 }
 0x6a4   : > { %v2189_v61 = vpop.xlane.xlu0 %2188 }
 0x6a5   : > { %v2191_v62 = vmul.f32 0.03125, %v2189_v61 }
 0x6a7   : > { %v2192_v63 = vsub.f32 %v2186_v58, %v2191_v62 }
 0x6a9   : > { %v2193_v46 = vmul.f32 %v2192_v63, %v2192_v63 }
 0x6ab   : > { %v2194_v0 = vsel %vm930_vm3, %v2193_v46, 0.0 }
 0x6ac   : > { %2195 = vadd.xlane.f32.xlu1 %v2194_v0 }
 0x735   : > { %v2196_v3 = vpop.xlane.xlu1 %2195 }
 0x736   : > { %v2197_v4 = vmul.f32 0.03125, %v2196_v3 }
 0x738   : > { %v2198_v5 = vadd.f32 1e-06, %v2197_v4 }
 0x73a   : > { %3076 = vrsqrt.f32 %v2198_v5 }
 0x747   : > { %v3077_v6 = vpop.eup %3076 }
 0x748   : > { %v2200_v8 = vmul.f32 %v3077_v6, %v2192_v63 }
 0x74a   : > { %v2207_v10 = vmul.f32 %v2672_v7, %v2200_v8 }
 0x74c   : > { %v2214_v11 = vadd.f32 %v2673_v9, %v2207_v10 }
 0x74e   : > { %v2215_v12 = vpack.c.bf16 %v2214_v11, %v2214_v11 }
 0x750   : > { %2938 = vmatmul.mubr.msk.bf16.vlgmr.msra.gmra.mxu0 %vm930_vm3, %v2215_v12 }
 0x810   : > { %v2271_v16 = vpop.f32.mrf.mxu0 }
 0x811   : > { %v2272_v17 = vadd.f32 %v2674_v15, %v2271_v16 }
 0x812   : > { %v2939_v18 = vpop.f32.mrf.mxu0 }
 0x813   : > { %v2277_v19 = vmax.f32 %v2272_v17, 0.0 }
 0x814   : > { %v2274_v20 = vpop.f32.mrf.mxu0 }
 0x815   : > { %v2278_v21 = vpack.c.bf16 %v2277_v19, %v2277_v19 }
 0x816   : > { %v2940_v22 = vpop.f32.mrf.mxu0 }
 0x817   : > { %2950 = vmatmul.mubr.msk.bf16.vlgmr.msra.gmra.mxu1 %vm2309_vm8, %v2278_v21 }
 0x8d7   : > { %v2347_v23 = vpop.f32.mrf.mxu1 }
 0x8d8   : > { %v2348_v24 = vadd.f32 %v2678_v27, %v2347_v23 }
 0x8d9   : > { %v2951_v25 = vpop.f32.mrf.mxu1 }
 0x8da   : > { %v2353_v26 = vadd.f32 %v2348_v24, %v2214_v11 }
 0x8db   : > { %v2350_v28 = vpop.f32.mrf.mxu1 }
 0x8dc   : > { %v2354_v29 = vsel %vm930_vm3, %v2353_v26, 0.0 }
 0x8dd   : > { %2355 = vadd.xlane.f32.xlu0 %v2354_v29  ;;  %v2952_v30 = vpop.f32.mrf.mxu1 }
 0x966   : > { %v2356_v32 = vpop.xlane.xlu0 %2355 }
 0x967   : > { %v2357_v33 = vmul.f32 0.03125, %v2356_v32 }
 0x969   : > { %v2358_v34 = vsub.f32 %v2353_v26, %v2357_v33 }
 0x96b   : > { %v2359_v35 = vmul.f32 %v2358_v34, %v2358_v34 }
 0x96d   : > { %v2360_v36 = vsel %vm930_vm3, %v2359_v35, 0.0 }
 0x96e   : > { %2361 = vadd.xlane.f32.xlu1 %v2360_v36 }
 0x9f7   : > { %v2362_v37 = vpop.xlane.xlu1 %2361 }
 0x9f8   : > { %v2363_v38 = vmul.f32 0.03125, %v2362_v37 }
 0x9fa   : > { %v2364_v39 = vadd.f32 1e-06, %v2363_v38 }
 0x9fc   : > { %3078 = vrsqrt.f32 %v2364_v39 }
 0xa09   : > { %v3079_v40 = vpop.eup %3078 }
 0xa0a   : > { %v2366_v42 = vmul.f32 %v3079_v40, %v2358_v34 }
 0xa0c   : > { %v2373_v44 = vmul.f32 %v2684_v41, %v2366_v42  ;;  %2385 = sbr.rel (%p2686_p6) target bundleno = 2578 (0xa12), region = 96 }
 0xa0e   : > { %v2380_v45 = vadd.f32 %v2685_v43, %v2373_v44 }
 0xa10   : > { %2381 = vst.msk [vmem:[#allocation2] sm:$0xff] %vm930_vm3, %v2380_v45 }
 0xa11   : > { %2386 = vst.msk [vmem:[%s3881_s8] sm:$0xff] %vm930_vm3, %v2380_v45 }
 0xa12 PF: > { %s3882_s20 = sld [smem:[#allocation13_spill]]  ;;  %s3192_s2 = smov [#allocation5]  }
 0xa13   : > { %s3883_s3 = sld [smem:[#allocation22_spill]]  ;;  %s3096_s19 = sshll.u32 %s3192_s2, 4  ;;  %s3097_s19 = int_to_ptr.vmem [resolvable:$false] %s3096_s19 }
 0xa14   : > { %s3884_s25 = sld [smem:[#allocation10_spill]]  ;;  %s3098_s21 = scalar_lea.vmem %s3097_s19, 256 }
 0xa15   : > { %s3886_s28 = sld [smem:[#allocation39_spill]] }
 0xa18   : > { %s2688_s16 = sshll.u32 %s3882_s20, 7 }
 0xa19   : > { %s3887_s6 = scalar_lea.vmem [#allocation5], %s3883_s3 }
 0xa1a   : > { %s2401_s9 = sshll.u32 %s3887_s6, 4  ;;  %s3888_s22 = sand.u32 1, %s3884_s25   ;;  %s2402_s9 = int_to_ptr.vmem [resolvable:$true] %s2401_s9 }
 0xa1b   : > { %s2399_s12 = scalar_lea.hbm %s3886_s28, %s2688_s16  ;;  %s2388_s7 = scalar_lea.sflag [#allocation6], %s3888_s22 }
 0xa1c   : > { %s3092_s14 = scalar_lea.vmem %s2402_s9, 128  ;;  %p3099_p11 = scmp.lt.s32.totalorder %s2402_s9, %s3097_s19 }
 0xa1d   : > { %p3093_p7 = scmp.ne.s32.totalorder %s2402_s9, %s3092_s14  ;;  %p3100_p12 = scmp.lt.s32.totalorder %s3098_s21, %s3092_s14 }
 0xa1f   : > { %p3094_p9 = pnand %p3093_p7, %p3340_p8  ;;  %p3101_p13 = por %p3100_p12, %p3099_p11 }
 0xa21   : > { %p3095_p10 = pneg %p3094_p9 }
 0xa23   : > { %p3102_p1 = pnand %p3101_p13, %p3095_p10 }
 0xa25   : > { %3105 = shalt.err (!%p3102_p1)
}
 0xa26   : > { %s3106_s29 = scalar_lea.hbm %s2399_s12, 128  ;;  %s3110_s26 = scalar_lea.hbm %s3886_s28, 256 }
 0xa27   : > { %p3107_p2 = scmp.ne.s32.totalorder %s2399_s12, %s3106_s29  ;;  %p3111_p5 = scmp.lt.s32.totalorder %s2399_s12, %s3886_s28 }
 0xa28   : > { %p3112_p6 = scmp.lt.s32.totalorder %s3110_s26, %s3106_s29 }
 0xa29   : > { %p3108_p3 = pnand %p3107_p2, %p3340_p8 }
 0xa2a   : > { %p3113_p7 = por %p3112_p6, %p3111_p5 }
 0xa2b   : > { %p3109_p4 = pneg %p3108_p3 }
 0xa2d   : > { %p3114_p9 = pnand %p3113_p7, %p3109_p4 }
 0xa2f   : > { %3117 = shalt.err (!%p3114_p9)
}
 0xa30   : > { %2953 = dma.vmem_to_hbm [thread:$0]  (%p3340_p8), %s2402_s9, 128, %s2399_s12, %s2388_s7  }
 0xa31 PF: > { %s3889_s4 = sld [smem:[#allocation16_spill]] }
 0xa32   : > { %s3890_s5 = sld [smem:[#allocation9_spill]] }
 0xa37   : > { %p2959_p10 = scmp.ge.s32.totalorder %s3889_s4, 2 }
 0xa38   : > { %s2413_s20 = sand.u32 1, %s3890_s5  }
 0xa39   : > { %p2956_p11 = pnand %p2959_p10, %p3350_p0  ;;  %s2414_s3 = scalar_lea.sflag [#allocation6], %s2413_s20 }
 0xa3b   : > { %p2957_p12 = pneg %p2956_p11 }
 0xa3d   : > { %3153 = dma.done.wait (%p2957_p12), %s2414_s3, 128  }
 0xa3e   : > { %3155 = vsyncadd (%p2957_p12), %s2414_s3, 4294967168  ;;  %s37_s5 = sadd.s32 1, %s3889_s4   ;;  %s3892_s19 = sld [smem:[#allocation10_spill]] }
 0xa3f   : > { %p34_p13 = scmp.ge.s32.totalorder %s37_s5, 6   ;;  %s3893_s1 = sld [smem:[#allocation11_spill]] }
 0xa40   : > { %s3894_s20 = sld [smem:[#allocation21_spill]] }
 0xa41   : > { %s3895_s21 = sld [smem:[#allocation14_spill]]  ;;  %36 = sbr.rel (!%p34_p13) target bundleno = 41 (0x29), region = 175 }
 0xa42   : > { %s3896_s22 = sld [smem:[#allocation15_spill]] }
 0xa43   : > { %s3897_s2 = sld [smem:[#allocation17_spill]] }
 0xa44   : > { %s3898_s23 = sld [smem:[#allocation19_spill]] }
 0xa46   :  { %2419 = vsyncpa [#allocation6], 1 }
 0xa47   :  { %2421 = vsyncpa [#allocation6 + $0x1], 1 }

</bundles_post_ra>
